<compile_context>
chip_gen: v7x
topology: tpu7x:2x2x1
jax: 0.10.0
libtpu: 0.0.40
codegen_flags: <defaults>
</compile_context>

<pallas_src>
import functools

import jax
import jax.numpy as jnp
from jax.experimental import pallas as pl
from jax.experimental.pallas import tpu as pltpu

NEG_SLOPE = 0.2                 # nn.LeakyReLU(0.2)
BN_EPS = 1e-5                   # torch BatchNorm2d default eps
LANE = 128                      # TPU lane width
COMPUTE_DTYPE = jnp.bfloat16    # MXU input / inter-layer activation dtype


# ---------------------------------------------------------------------------
# Helpers
# ---------------------------------------------------------------------------
def _round_up(x, m):
    return (x + m - 1) // m * m


def _pick_tm(m):
    return min(256, _round_up(m, 8))


# ---------------------------------------------------------------------------
# Kernels
# ---------------------------------------------------------------------------
def _conv_bias_lrelu_kernel(x_ref, w_ref, b_ref, o_ref):
    """o = lrelu(x @ w + b); full-K single block, grid over M tiles."""
    y = jnp.dot(x_ref[...], w_ref[...],
                preferred_element_type=jnp.float32) + b_ref[...]
    o_ref[...] = jnp.where(y >= 0, y, NEG_SLOPE * y).astype(o_ref.dtype)


def _conv_bn_lrelu_kernel(x_ref, w_ref, g_ref, b_ref, o_ref,
                          y_scr, sum_scr, sq_scr, scale_scr, shift_scr,
                          *, count, tm):
    """Fused conv GEMM + BatchNorm(batch stats, biased var) + LeakyReLU.

    grid = (2, M_tiles).  Phase 0: GEMM, keep pre-BN f32 activation resident in
    VMEM scratch, accumulate per-channel sum / sum-of-squares.  Phase 1: compute
    scale/shift once, then normalize + lrelu every M tile (lane-dense stores).
    Note: var = E[y^2] - mean^2 in f32 (clamped at 0) — cancellation-prone when
    |mean| >> std, same caveat as before.
    """
    phase = pl.program_id(0)
    i = pl.program_id(1)
    row0 = pl.multiple_of(i * tm, tm)

    @pl.when((phase == 0) & (i == 0))
    def _init_stats():
        sum_scr[...] = jnp.zeros_like(sum_scr)
        sq_scr[...] = jnp.zeros_like(sq_scr)

    @pl.when(phase == 0)
    def _gemm_and_stats():
        y = jnp.dot(x_ref[...], w_ref[...], preferred_element_type=jnp.float32)
        y_scr[pl.ds(row0, tm), :] = y
        sum_scr[...] += jnp.sum(y, axis=0, keepdims=True)
        sq_scr[...] += jnp.sum(y * y, axis=0, keepdims=True)

    @pl.when((phase == 1) & (i == 0))
    def _finalize_stats():                      # computed once per layer
        inv_n = 1.0 / count
        mean = sum_scr[...] * inv_n
        var = jnp.maximum(sq_scr[...] * inv_n - mean * mean, 0.0)
        scale = g_ref[...] * jax.lax.rsqrt(var + BN_EPS)
        scale_scr[...] = scale
        shift_scr[...] = b_ref[...] - mean * scale

    @pl.when(phase == 1)
    def _normalize():
        z = y_scr[pl.ds(row0, tm), :] * scale_scr[...] + shift_scr[...]
        o_ref[...] = jnp.where(z >= 0, z, NEG_SLOPE * z).astype(o_ref.dtype)


def _dense_head_kernel(x_ref, w1_ref, b1_ref, w2_ref, b2_ref, o_ref):
    """Un-tiled fused dense1 + lrelu + dense2 + sigmoid (single grid step)."""
    h = jnp.dot(x_ref[...], w1_ref[...],
                preferred_element_type=jnp.float32) + b1_ref[...]
    h = jnp.where(h >= 0, h, NEG_SLOPE * h)
    y = jnp.dot(h.astype(COMPUTE_DTYPE), w2_ref[...],
                preferred_element_type=jnp.float32) + b2_ref[...]
    o_ref[...] = 1.0 / (1.0 + jnp.exp(-y))      # exact sigmoid (exp on the EUP)


# ---------------------------------------------------------------------------
# pallas_call wrappers
# ---------------------------------------------------------------------------
def conv_bias_lrelu(cols, w, b, out_dtype=COMPUTE_DTYPE):
    kp, cpad = w.shape
    m, ktrue = cols.shape
    if ktrue < kp:
        cols = jnp.pad(cols, ((0, 0), (0, kp - ktrue)))
    tm = _pick_tm(m)
    mp = _round_up(m, tm)
    if mp != m:
        cols = jnp.pad(cols, ((0, mp - m), (0, 0)))
    out = pl.pallas_call(
        _conv_bias_lrelu_kernel,
        out_shape=jax.ShapeDtypeStruct((mp, cpad), out_dtype),
        grid=(mp // tm,),
        in_specs=[
            pl.BlockSpec((tm, kp), lambda i: (i, 0)),
            pl.BlockSpec((kp, cpad), lambda i: (0, 0)),
            pl.BlockSpec((1, cpad), lambda i: (0, 0)),
        ],
        out_specs=pl.BlockSpec((tm, cpad), lambda i: (i, 0)),
        compiler_params=pltpu.CompilerParams(
            dimension_semantics=("parallel",)),          # both v7x cores get work
    )(cols.astype(COMPUTE_DTYPE), w, b.reshape(1, cpad).astype(jnp.float32))
    return out[:m]


def conv_bn_lrelu(cols, w, gamma, beta, out_dtype=COMPUTE_DTYPE):
    kp, cpad = w.shape
    m, ktrue = cols.shape
    count = m                                   # real rows before any padding
    if ktrue < kp:
        cols = jnp.pad(cols, ((0, 0), (0, kp - ktrue)))
    tm = _pick_tm(m)
    mp = _round_up(m, tm)
    if mp != m:
        cols = jnp.pad(cols, ((0, mp - m), (0, 0)))   # zero rows: no effect on stats
    mt = mp // tm
    kernel = functools.partial(_conv_bn_lrelu_kernel, count=float(count), tm=tm)
    out = pl.pallas_call(
        kernel,
        out_shape=jax.ShapeDtypeStruct((mp, cpad), out_dtype),
        grid=(2, mt),                           # axis 0: GEMM+stats / normalize phase
        in_specs=[
            # Phase 1 pins the x index to block 0 so cols is not re-streamed.
            pl.BlockSpec((tm, kp), lambda p, i: ((1 - p) * i, 0)),
            pl.BlockSpec((kp, cpad), lambda p, i: (0, 0)),
            pl.BlockSpec((1, cpad), lambda p, i: (0, 0)),
            pl.BlockSpec((1, cpad), lambda p, i: (0, 0)),
        ],
        # p*i keeps the out index pinned to 0 during phase 0: no writeback of
        # unwritten blocks and no revisit after leaving a block.
        out_specs=pl.BlockSpec((tm, cpad), lambda p, i: (p * i, 0)),
        scratch_shapes=[
            pltpu.VMEM((mp, cpad), jnp.float32),    # pre-BN activation, VMEM-resident
            pltpu.VMEM((1, cpad), jnp.float32),     # per-channel sum
            pltpu.VMEM((1, cpad), jnp.float32),     # per-channel sum of squares
            pltpu.VMEM((1, cpad), jnp.float32),     # BN scale (computed once)
            pltpu.VMEM((1, cpad), jnp.float32),     # BN shift (computed once)
        ],
        compiler_params=pltpu.CompilerParams(
            # Stats accumulate into shared scratch -> M axis must stay serial.
            dimension_semantics=("arbitrary", "arbitrary")),
    )(cols.astype(COMPUTE_DTYPE), w,
      gamma.reshape(1, cpad).astype(jnp.float32),
      beta.reshape(1, cpad).astype(jnp.float32))
    return out[:m]


def dense_head(flat, w1, b1, w2, b2):
    """Fused dense1(lrelu) + dense2(sigmoid), single grid step (no K tiling)."""
    bsz, k1 = flat.shape
    kp, h1 = w1.shape
    nout = w2.shape[1]
    if k1 < kp:
        flat = jnp.pad(flat, ((0, 0), (0, kp - k1)))
    bp = _round_up(bsz, 8)
    if bp != bsz:
        flat = jnp.pad(flat, ((0, bp - bsz), (0, 0)))
    out = pl.pallas_call(
        _dense_head_kernel,
        out_shape=jax.ShapeDtypeStruct((bp, nout), jnp.float32),
        grid=(1,),
        in_specs=[
            pl.BlockSpec((bp, kp), lambda i: (0, 0)),
            pl.BlockSpec((kp, h1), lambda i: (0, 0)),
            pl.BlockSpec((1, h1), lambda i: (0, 0)),
            pl.BlockSpec((h1, nout), lambda i: (0, 0)),
            pl.BlockSpec((1, nout), lambda i: (0, 0)),
        ],
        out_specs=pl.BlockSpec((bp, nout), lambda i: (0, 0)),
        compiler_params=pltpu.CompilerParams(dimension_semantics=("arbitrary",)),
    )(flat.astype(COMPUTE_DTYPE), w1, b1.reshape(1, h1).astype(jnp.float32),
      w2, b2.reshape(1, nout).astype(jnp.float32))
    return out[:bsz, :1]                         # true dense2 width is 1


# ---------------------------------------------------------------------------
# XLA glue: im2col (dense channels) + layer composition
# ---------------------------------------------------------------------------
def im2col(x_nhwc, cin, k=3, stride=1, pad=1):
    # TODO(synk): form patches inside the conv kernel (tap-indexed K axis /
    # halo DMA) instead of materializing the expanded cols matrix in HBM.
    x = x_nhwc[..., :cin]                        # drop channel padding BEFORE 9x expansion
    n, h, w, _ = x.shape
    xp = jnp.pad(x, ((0, 0), (pad, pad), (pad, pad), (0, 0)))
    ho = (h + 2 * pad - k) // stride + 1
    wo = (w + 2 * pad - k) // stride + 1
    patches = [xp[:, ki:ki + stride * ho:stride, kj:kj + stride * wo:stride, :]
               for ki in range(k) for kj in range(k)]
    cols = jnp.stack(patches, axis=3).reshape(n * ho * wo, k * k * cin)
    return cols, (n, ho, wo)


def conv_block(x_nhwc, p, cin, stride):
    """ConvBlock: conv3x3(pad=1) -> [BatchNorm(batch stats)] -> LeakyReLU(0.2)."""
    cols, (n, ho, wo) = im2col(x_nhwc, cin, 3, stride, 1)
    if "gamma" in p:
        # Conv bias dropped: it cancels against the BN mean subtraction.
        y = conv_bn_lrelu(cols, p["w"], p["gamma"], p["beta"])
    else:
        y = conv_bias_lrelu(cols, p["w"], p["b"])
    return y.reshape(n, ho, wo, y.shape[1])


# ---------------------------------------------------------------------------
# Parameters: true-shape init + kernel-layout preparation
# ---------------------------------------------------------------------------
def init_params(key, num_channels, base_filter, image_size):
    """Synthetic parameters mimicking weight_init(mean=0, std=0.02), true shapes."""
    keys = iter(jax.random.split(key, 32))

    def conv_params(cin, cout, norm):
        p = {"w": 0.02 * jax.random.normal(next(keys), (9 * cin, cout), jnp.float32),
             "b": jnp.zeros((cout,), jnp.float32)}
        if norm == "batch":
            p["gamma"] = 1.0 + 0.02 * jax.random.normal(next(keys), (cout,), jnp.float32)
            p["beta"] = jnp.zeros((cout,), jnp.float32)
        return p

    def dense_params(din, dout):
        return {"w": 0.02 * jax.random.normal(next(keys), (din, dout), jnp.float32),
                "b": jnp.zeros((dout,), jnp.float32)}

    bf = base_filter
    return {
        "input_conv": conv_params(num_channels, bf, None),
        "conv_blocks": [
            conv_params(bf, bf, "batch"),            # stride 2
            conv_params(bf, 2 * bf, "batch"),        # stride 1
            conv_params(2 * bf, 2 * bf, "batch"),    # stride 2
            conv_params(2 * bf, 4 * bf, "batch"),    # stride 1
            conv_params(4 * bf, 4 * bf, "batch"),    # stride 2
        ],
        "dense1": dense_params(base_filter * 4 * (image_size // 8) ** 2, bf * 8),
        "dense2": dense_params(bf * 8, 1),
    }


def prepare_params(params, num_channels, base_filter, image_size):
    """Pack conv K densely (pad 9*cin once), pad cout to lane width, permute
    dense1 rows to NHWC order, cast GEMM operands to bf16."""
    assert image_size % 8 == 0, "image_size must be divisible by 8"
    bf = base_filter

    def prep_conv(p, cin, cout, has_bn):
        ktrue, kp = 9 * cin, _round_up(9 * cin, LANE)     # dense K: pad 9*cin once
        cop = _round_up(cout, LANE)
        out = {"w": jnp.pad(p["w"], ((0, kp - ktrue),
                                     (0, cop - cout))).astype(COMPUTE_DTYPE)}
        if has_bn:
            # gamma/beta pads are exactly 0 => padded channels normalize to 0.
            out["gamma"] = jnp.pad(p["gamma"], (0, cop - cout)).astype(jnp.float32)
            out["beta"] = jnp.pad(p["beta"], (0, cop - cout)).astype(jnp.float32)
        else:
            out["b"] = jnp.pad(p["b"], (0, cop - cout)).astype(jnp.float32)
        return out

    hw = image_size // 8
    c_last = 4 * bf
    d1, d2 = params["dense1"], params["dense2"]
    din = c_last * hw * hw
    assert d1["w"].shape[0] == din
    dout1 = d1["w"].shape[1]
    dinp, dout1p = _round_up(din, LANE), _round_up(dout1, LANE)
    # Permute dense1 rows from torch NCHW-flatten order to the NHWC order the
    # conv kernels produce, so the runtime flatten needs no transpose.
    w1 = jnp.transpose(d1["w"].reshape(c_last, hw, hw, dout1), (1, 2, 0, 3))
    w1 = jnp.pad(w1.reshape(din, dout1), ((0, dinp - din), (0, dout1p - dout1)))
    b1 = jnp.pad(d1["b"], (0, dout1p - dout1))
    w2 = jnp.pad(d2["w"], ((0, dout1p - dout1), (0, LANE - d2["w"].shape[1])))
    b2 = jnp.pad(d2["b"], (0, LANE - d2["b"].shape[0]))

    cins = [bf, bf, 2 * bf, 2 * bf, 4 * bf]
    couts = [bf, 2 * bf, 2 * bf, 4 * bf, 4 * bf]
    return {
        "input_conv": prep_conv(params["input_conv"], num_channels, bf, False),
        "conv_blocks": [prep_conv(p, ci, co, True)
                        for p, ci, co in zip(params["conv_blocks"], cins, couts)],
        "w1": w1.astype(COMPUTE_DTYPE), "b1": b1.astype(jnp.float32),
        "w2": w2.astype(COMPUTE_DTYPE), "b2": b2.astype(jnp.float32),
    }


# ---------------------------------------------------------------------------
# Forward pass
# ---------------------------------------------------------------------------
def discriminator_forward(kp, x_nchw, *, num_channels, base_filter, image_size):
    del image_size                               # spatial dims come from x itself
    bf = base_filter
    x = jnp.transpose(x_nchw, (0, 2, 3, 1)).astype(COMPUTE_DTYPE)   # NCHW -> NHWC

    x = conv_block(x, kp["input_conv"], cin=num_channels, stride=1)
    cins = (bf, bf, 2 * bf, 2 * bf, 4 * bf)
    for p, ci, s in zip(kp["conv_blocks"], cins, (2, 1, 2, 1, 2)):
        x = conv_block(x, p, cin=ci, stride=s)

    # Flatten only the real channels; dense1 rows were pre-permuted to NHWC order.
    flat = x[..., :4 * bf].reshape(x.shape[0], -1)
    return dense_head(flat, kp["w1"], kp["b1"], kp["w2"], kp["b2"])


if __name__ == "__main__":
    num_channels, base_filter, image_size, batch = 3, 8, 16, 2

    key = jax.random.PRNGKey(0)
    pkey, xkey = jax.random.split(key)
    params = init_params(pkey, num_channels, base_filter, image_size)
    kparams = prepare_params(params, num_channels, base_filter, image_size)
    x = jax.random.normal(xkey, (batch, num_channels, image_size, image_size),
                          jnp.float32)

    fwd = jax.jit(functools.partial(discriminator_forward,
                                    num_channels=num_channels,
                                    base_filter=base_filter,
                                    image_size=image_size))
    out = jax.block_until_ready(fwd(kparams, x))

    assert out.shape == (batch, 1), out.shape
    assert bool(jnp.all(jnp.isfinite(out)))
    assert bool(jnp.all((out >= 0.0) & (out <= 1.0)))   # sigmoid output range
    print("KERNEL_OK")
</pallas_src>

<mosaic_0001>
module attributes {stable_mosaic.version = 11 : i64} {
  func.func @_conv_bias_lrelu_kernel(%arg0: i32, %arg1: memref<256x128xbf16, #tpu.memory_space<vmem>>, %arg2: memref<128x128xbf16, #tpu.memory_space<vmem>>, %arg3: memref<1x128xf32, #tpu.memory_space<vmem>>, %arg4: memref<256x128xbf16, #tpu.memory_space<vmem>>) attributes {dimension_semantics = [#tpu.dimension_semantics<parallel>], iteration_bounds = array<i64: 2>, scalar_prefetch = 0 : i64, scratch_operands = 0 : i64, tpu.core_type = #tpu.core_type<tc>, window_params = [{transform_indices = @transform_0, window_bounds = array<i64: 256, 128>}, {pipeline_mode = #tpu.pipeline_mode<synchronous>, transform_indices = @transform_1, window_bounds = array<i64: 128, 128>}, {pipeline_mode = #tpu.pipeline_mode<synchronous>, transform_indices = @transform_2, window_bounds = array<i64: 1, 128>}, {transform_indices = @transform_3, window_bounds = array<i64: 256, 128>}]} {
    %c0 = arith.constant 0 : index
    %c0_0 = arith.constant 0 : index
    %0 = vector.load %arg1[%c0, %c0_0] : memref<256x128xbf16, #tpu.memory_space<vmem>>, vector<256x128xbf16>
    %c0_1 = arith.constant 0 : index
    %c0_2 = arith.constant 0 : index
    %1 = vector.load %arg2[%c0_1, %c0_2] : memref<128x128xbf16, #tpu.memory_space<vmem>>, vector<128x128xbf16>
    %cst = arith.constant dense<0.000000e+00> : vector<256x128xf32>
    %2 = tpu.matmul %0, %1, %cst {dimension_numbers = #tpu.dot_dimension_numbers<[1], [0], [0], [1], [0, 0, 1, 1], [], []>} : vector<256x128xbf16>, vector<128x128xbf16>, vector<256x128xf32> -> vector<256x128xf32>
    %c0_3 = arith.constant 0 : index
    %c0_4 = arith.constant 0 : index
    %3 = vector.load %arg3[%c0_3, %c0_4] : memref<1x128xf32, #tpu.memory_space<vmem>>, vector<1x128xf32>
    %4 = vector.broadcast %3 : vector<1x128xf32> to vector<256x128xf32>
    %5 = arith.addf %2, %4 : vector<256x128xf32>
    %cst_5 = arith.constant 0.000000e+00 : f32
    %6 = vector.broadcast %cst_5 : f32 to vector<256x128xf32>
    %7 = arith.cmpf oge, %5, %6 : vector<256x128xf32>
    %cst_6 = arith.constant 2.000000e-01 : f32
    %8 = vector.broadcast %cst_6 : f32 to vector<256x128xf32>
    %9 = arith.mulf %8, %5 : vector<256x128xf32>
    %10 = arith.select %7, %5, %9 : vector<256x128xi1>, vector<256x128xf32>
    %11 = arith.truncf %10 : vector<256x128xf32> to vector<256x128xbf16>
    %c0_7 = arith.constant 0 : index
    %c0_8 = arith.constant 0 : index
    %12 = vector.load %arg4[%c0_7, %c0_8] : memref<256x128xbf16, #tpu.memory_space<vmem>>, vector<256x128xbf16>
    tpu.vector_store %arg4[%c0_7, %c0_8], %11 {strides = array<i32>} : memref<256x128xbf16, #tpu.memory_space<vmem>>, vector<256x128xbf16>,
    return
  }
  func.func @transform_0(%arg0: i32) -> (i32, i32) {
    %c0_i32 = arith.constant 0 : i32
    %c0_i32_0 = arith.constant 0 : i32
    return %arg0, %c0_i32 : i32, i32
  }
  func.func @transform_1(%arg0: i32) -> (i32, i32) {
    %c0_i32 = arith.constant 0 : i32
    %c0_i32_0 = arith.constant 0 : i32
    %c0_i32_1 = arith.constant 0 : i32
    return %c0_i32, %c0_i32_0 : i32, i32
  }
  func.func @transform_2(%arg0: i32) -> (i32, i32) {
    %c0_i32 = arith.constant 0 : i32
    %c0_i32_0 = arith.constant 0 : i32
    %c0_i32_1 = arith.constant 0 : i32
    return %c0_i32, %c0_i32_0 : i32, i32
  }
  func.func @transform_3(%arg0: i32) -> (i32, i32) {
    %c0_i32 = arith.constant 0 : i32
    %c0_i32_0 = arith.constant 0 : i32
    return %arg0, %c0_i32 : i32, i32
  }
}

module attributes {stable_mosaic.version = 11 : i64} {
  func.func @_conv_bn_lrelu_kernel(%arg0: i32, %arg1: i32, %arg2: memref<128x128xbf16, #tpu.memory_space<vmem>>, %arg3: memref<128x128xbf16, #tpu.memory_space<vmem>>, %arg4: memref<1x128xf32, #tpu.memory_space<vmem>>, %arg5: memref<1x128xf32, #tpu.memory_space<vmem>>, %arg6: memref<128x128xbf16, #tpu.memory_space<vmem>>, %arg7: memref<128x128xf32, #tpu.memory_space<vmem>>, %arg8: memref<1x128xf32, #tpu.memory_space<vmem>>, %arg9: memref<1x128xf32, #tpu.memory_space<vmem>>, %arg10: memref<1x128xf32, #tpu.memory_space<vmem>>, %arg11: memref<1x128xf32, #tpu.memory_space<vmem>>) attributes {dimension_semantics = [#tpu.dimension_semantics<arbitrary>, #tpu.dimension_semantics<arbitrary>], iteration_bounds = array<i64: 2, 1>, scalar_prefetch = 0 : i64, scratch_operands = 5 : i64, tpu.core_type = #tpu.core_type<tc>, window_params = [{transform_indices = @transform_0, window_bounds = array<i64: 128, 128>}, {pipeline_mode = #tpu.pipeline_mode<synchronous>, transform_indices = @transform_1, window_bounds = array<i64: 128, 128>}, {pipeline_mode = #tpu.pipeline_mode<synchronous>, transform_indices = @transform_2, window_bounds = array<i64: 1, 128>}, {pipeline_mode = #tpu.pipeline_mode<synchronous>, transform_indices = @transform_3, window_bounds = array<i64: 1, 128>}, {transform_indices = @transform_4, window_bounds = array<i64: 128, 128>}]} {
    %c128_i32 = arith.constant 128 : i32
    %0 = arith.muli %arg1, %c128_i32 : i32
    %1 = tpu.assume_multiple %0, 128 : i32
    %c0_i32 = arith.constant 0 : i32
    %2 = arith.cmpi eq, %arg0, %c0_i32 : i32
    %c0_i32_0 = arith.constant 0 : i32
    %3 = arith.cmpi eq, %arg1, %c0_i32_0 : i32
    %4 = arith.andi %2, %3 : i1
    %5 = arith.extui %4 : i1 to i32
    %c0_i32_1 = arith.constant 0 : i32
    %6 = arith.cmpi ne, %5, %c0_i32_1 : i32
    scf.if %6 {
      %cst = arith.constant 0.000000e+00 : f32
      %18 = vector.broadcast %cst : f32 to vector<1x128xf32>
      %c0 = arith.constant 0 : index
      %c0_8 = arith.constant 0 : index
      %19 = vector.load %arg8[%c0, %c0_8] : memref<1x128xf32, #tpu.memory_space<vmem>>, vector<1x128xf32>
      tpu.vector_store %arg8[%c0, %c0_8], %18 {strides = array<i32>} : memref<1x128xf32, #tpu.memory_space<vmem>>, vector<1x128xf32>,
      %cst_9 = arith.constant 0.000000e+00 : f32
      %20 = vector.broadcast %cst_9 : f32 to vector<1x128xf32>
      %c0_10 = arith.constant 0 : index
      %c0_11 = arith.constant 0 : index
      %21 = vector.load %arg9[%c0_10, %c0_11] : memref<1x128xf32, #tpu.memory_space<vmem>>, vector<1x128xf32>
      tpu.vector_store %arg9[%c0_10, %c0_11], %20 {strides = array<i32>} : memref<1x128xf32, #tpu.memory_space<vmem>>, vector<1x128xf32>,
    } else {
    }
    %c0_i32_2 = arith.constant 0 : i32
    %7 = arith.cmpi eq, %arg0, %c0_i32_2 : i32
    %8 = arith.extui %7 : i1 to i32
    %c0_i32_3 = arith.constant 0 : i32
    %9 = arith.cmpi ne, %8, %c0_i32_3 : i32
    scf.if %9 {
      %c0 = arith.constant 0 : index
      %c0_8 = arith.constant 0 : index
      %18 = vector.load %arg2[%c0, %c0_8] : memref<128x128xbf16, #tpu.memory_space<vmem>>, vector<128x128xbf16>
      %c0_9 = arith.constant 0 : index
      %c0_10 = arith.constant 0 : index
      %19 = vector.load %arg3[%c0_9, %c0_10] : memref<128x128xbf16, #tpu.memory_space<vmem>>, vector<128x128xbf16>
      %cst = arith.constant dense<0.000000e+00> : vector<128x128xf32>
      %20 = tpu.matmul %18, %19, %cst {dimension_numbers = #tpu.dot_dimension_numbers<[1], [0], [0], [1], [0, 0, 1, 1], [], []>} : vector<128x128xbf16>, vector<128x128xbf16>, vector<128x128xf32> -> vector<128x128xf32>
      %21 = arith.index_cast %1 : i32 to index
      %c0_11 = arith.constant 0 : index
      %22 = vector.load %arg7[%21, %c0_11] : memref<128x128xf32, #tpu.memory_space<vmem>>, vector<128x128xf32>
      tpu.vector_store %arg7[%21, %c0_11], %20 {strides = array<i32>} : memref<128x128xf32, #tpu.memory_space<vmem>>, vector<128x128xf32>,
      %c0_12 = arith.constant 0 : index
      %c0_13 = arith.constant 0 : index
      %23 = vector.load %arg8[%c0_12, %c0_13] : memref<1x128xf32, #tpu.memory_space<vmem>>, vector<1x128xf32>
      %cst_14 = arith.constant dense<0.000000e+00> : vector<128xf32>
      %24 = vector.multi_reduction <add>, %20, %cst_14 [0] : vector<128x128xf32> to vector<128xf32>
      %25 = vector.shape_cast %24 : vector<128xf32> to vector<1x128xf32>
      %26 = arith.addf %23, %25 : vector<1x128xf32>
      %c0_15 = arith.constant 0 : index
      %c0_16 = arith.constant 0 : index
      %27 = vector.load %arg8[%c0_15, %c0_16] : memref<1x128xf32, #tpu.memory_space<vmem>>, vector<1x128xf32>
      tpu.vector_store %arg8[%c0_15, %c0_16], %26 {strides = array<i32>} : memref<1x128xf32, #tpu.memory_space<vmem>>, vector<1x128xf32>,
      %c0_17 = arith.constant 0 : index
      %c0_18 = arith.constant 0 : index
      %28 = vector.load %arg9[%c0_17, %c0_18] : memref<1x128xf32, #tpu.memory_space<vmem>>, vector<1x128xf32>
      %29 = arith.mulf %20, %20 : vector<128x128xf32>
      %cst_19 = arith.constant dense<0.000000e+00> : vector<128xf32>
      %30 = vector.multi_reduction <add>, %29, %cst_19 [0] : vector<128x128xf32> to vector<128xf32>
      %31 = vector.shape_cast %30 : vector<128xf32> to vector<1x128xf32>
      %32 = arith.addf %28, %31 : vector<1x128xf32>
      %c0_20 = arith.constant 0 : index
      %c0_21 = arith.constant 0 : index
      %33 = vector.load %arg9[%c0_20, %c0_21] : memref<1x128xf32, #tpu.memory_space<vmem>>, vector<1x128xf32>
      tpu.vector_store %arg9[%c0_20, %c0_21], %32 {strides = array<i32>} : memref<1x128xf32, #tpu.memory_space<vmem>>, vector<1x128xf32>,
    } else {
    }
    %c1_i32 = arith.constant 1 : i32
    %10 = arith.cmpi eq, %arg0, %c1_i32 : i32
    %c0_i32_4 = arith.constant 0 : i32
    %11 = arith.cmpi eq, %arg1, %c0_i32_4 : i32
    %12 = arith.andi %10, %11 : i1
    %13 = arith.extui %12 : i1 to i32
    %c0_i32_5 = arith.constant 0 : i32
    %14 = arith.cmpi ne, %13, %c0_i32_5 : i32
    scf.if %14 {
      %c0 = arith.constant 0 : index
      %c0_8 = arith.constant 0 : index
      %18 = vector.load %arg8[%c0, %c0_8] : memref<1x128xf32, #tpu.memory_space<vmem>>, vector<1x128xf32>
      %cst = arith.constant 7.812500e-03 : f32
      %19 = vector.broadcast %cst : f32 to vector<1x128xf32>
      %20 = arith.mulf %18, %19 : vector<1x128xf32>
      %c0_9 = arith.constant 0 : index
      %c0_10 = arith.constant 0 : index
      %21 = vector.load %arg9[%c0_9, %c0_10] : memref<1x128xf32, #tpu.memory_space<vmem>>, vector<1x128xf32>
      %cst_11 = arith.constant 7.812500e-03 : f32
      %22 = vector.broadcast %cst_11 : f32 to vector<1x128xf32>
      %23 = arith.mulf %21, %22 : vector<1x128xf32>
      %24 = arith.mulf %20, %20 : vector<1x128xf32>
      %25 = arith.subf %23, %24 : vector<1x128xf32>
      %cst_12 = arith.constant 0.000000e+00 : f32
      %26 = vector.broadcast %cst_12 : f32 to vector<1x128xf32>
      %27 = arith.maximumf %25, %26 : vector<1x128xf32>
      %c0_13 = arith.constant 0 : index
      %c0_14 = arith.constant 0 : index
      %28 = vector.load %arg4[%c0_13, %c0_14] : memref<1x128xf32, #tpu.memory_space<vmem>>, vector<1x128xf32>
      %cst_15 = arith.constant 9.99999974E-6 : f32
      %29 = vector.broadcast %cst_15 : f32 to vector<1x128xf32>
      %30 = arith.addf %27, %29 : vector<1x128xf32>
      %31 = math.rsqrt %30 : vector<1x128xf32>
      %32 = arith.mulf %28, %31 : vector<1x128xf32>
      %c0_16 = arith.constant 0 : index
      %c0_17 = arith.constant 0 : index
      %33 = vector.load %arg10[%c0_16, %c0_17] : memref<1x128xf32, #tpu.memory_space<vmem>>, vector<1x128xf32>
      tpu.vector_store %arg10[%c0_16, %c0_17], %32 {strides = array<i32>} : memref<1x128xf32, #tpu.memory_space<vmem>>, vector<1x128xf32>,
      %c0_18 = arith.constant 0 : index
      %c0_19 = arith.constant 0 : index
      %34 = vector.load %arg5[%c0_18, %c0_19] : memref<1x128xf32, #tpu.memory_space<vmem>>, vector<1x128xf32>
      %35 = arith.mulf %20, %32 : vector<1x128xf32>
      %36 = arith.subf %34, %35 : vector<1x128xf32>
      %c0_20 = arith.constant 0 : index
      %c0_21 = arith.constant 0 : index
      %37 = vector.load %arg11[%c0_20, %c0_21] : memref<1x128xf32, #tpu.memory_space<vmem>>, vector<1x128xf32>
      tpu.vector_store %arg11[%c0_20, %c0_21], %36 {strides = array<i32>} : memref<1x128xf32, #tpu.memory_space<vmem>>, vector<1x128xf32>,
    } else {
    }
    %c1_i32_6 = arith.constant 1 : i32
    %15 = arith.cmpi eq, %arg0, %c1_i32_6 : i32
    %16 = arith.extui %15 : i1 to i32
    %c0_i32_7 = arith.constant 0 : i32
    %17 = arith.cmpi ne, %16, %c0_i32_7 : i32
    scf.if %17 {
      %18 = arith.index_cast %1 : i32 to index
      %c0 = arith.constant 0 : index
      %19 = vector.load %arg7[%18, %c0] : memref<128x128xf32, #tpu.memory_space<vmem>>, vector<128x128xf32>
      %c0_8 = arith.constant 0 : index
      %c0_9 = arith.constant 0 : index
      %20 = vector.load %arg10[%c0_8, %c0_9] : memref<1x128xf32, #tpu.memory_space<vmem>>, vector<1x128xf32>
      %21 = vector.broadcast %20 : vector<1x128xf32> to vector<128x128xf32>
      %22 = arith.mulf %19, %21 : vector<128x128xf32>
      %c0_10 = arith.constant 0 : index
      %c0_11 = arith.constant 0 : index
      %23 = vector.load %arg11[%c0_10, %c0_11] : memref<1x128xf32, #tpu.memory_space<vmem>>, vector<1x128xf32>
      %24 = vector.broadcast %23 : vector<1x128xf32> to vector<128x128xf32>
      %25 = arith.addf %22, %24 : vector<128x128xf32>
      %cst = arith.constant 0.000000e+00 : f32
      %26 = vector.broadcast %cst : f32 to vector<128x128xf32>
      %27 = arith.cmpf oge, %25, %26 : vector<128x128xf32>
      %cst_12 = arith.constant 2.000000e-01 : f32
      %28 = vector.broadcast %cst_12 : f32 to vector<128x128xf32>
      %29 = arith.mulf %28, %25 : vector<128x128xf32>
      %30 = arith.select %27, %25, %29 : vector<128x128xi1>, vector<128x128xf32>
      %31 = arith.truncf %30 : vector<128x128xf32> to vector<128x128xbf16>
      %c0_13 = arith.constant 0 : index
      %c0_14 = arith.constant 0 : index
      %32 = vector.load %arg6[%c0_13, %c0_14] : memref<128x128xbf16, #tpu.memory_space<vmem>>, vector<128x128xbf16>
      tpu.vector_store %arg6[%c0_13, %c0_14], %31 {strides = array<i32>} : memref<128x128xbf16, #tpu.memory_space<vmem>>, vector<128x128xbf16>,
    } else {
    }
    return
  }
  func.func @transform_0(%arg0: i32, %arg1: i32) -> (i32, i32) {
    %c1_i32 = arith.constant 1 : i32
    %0 = arith.subi %c1_i32, %arg0 : i32
    %1 = arith.muli %0, %arg1 : i32
    %c0_i32 = arith.constant 0 : i32
    %c0_i32_0 = arith.constant 0 : i32
    return %1, %c0_i32 : i32, i32
  }
  func.func @transform_1(%arg0: i32, %arg1: i32) -> (i32, i32) {
    %c0_i32 = arith.constant 0 : i32
    %c0_i32_0 = arith.constant 0 : i32
    %c0_i32_1 = arith.constant 0 : i32
    return %c0_i32, %c0_i32_0 : i32, i32
  }
  func.func @transform_2(%arg0: i32, %arg1: i32) -> (i32, i32) {
    %c0_i32 = arith.constant 0 : i32
    %c0_i32_0 = arith.constant 0 : i32
    %c0_i32_1 = arith.constant 0 : i32
    return %c0_i32, %c0_i32_0 : i32, i32
  }
  func.func @transform_3(%arg0: i32, %arg1: i32) -> (i32, i32) {
    %c0_i32 = arith.constant 0 : i32
    %c0_i32_0 = arith.constant 0 : i32
    %c0_i32_1 = arith.constant 0 : i32
    return %c0_i32, %c0_i32_0 : i32, i32
  }
  func.func @transform_4(%arg0: i32, %arg1: i32) -> (i32, i32) {
    %0 = arith.muli %arg0, %arg1 : i32
    %c0_i32 = arith.constant 0 : i32
    %c0_i32_0 = arith.constant 0 : i32
    return %0, %c0_i32 : i32, i32
  }
}

module attributes {stable_mosaic.version = 11 : i64} {
  func.func @_conv_bn_lrelu_kernel(%arg0: i32, %arg1: i32, %arg2: memref<32x256xbf16, #tpu.memory_space<vmem>>, %arg3: memref<256x128xbf16, #tpu.memory_space<vmem>>, %arg4: memref<1x128xf32, #tpu.memory_space<vmem>>, %arg5: memref<1x128xf32, #tpu.memory_space<vmem>>, %arg6: memref<32x128xbf16, #tpu.memory_space<vmem>>, %arg7: memref<32x128xf32, #tpu.memory_space<vmem>>, %arg8: memref<1x128xf32, #tpu.memory_space<vmem>>, %arg9: memref<1x128xf32, #tpu.memory_space<vmem>>, %arg10: memref<1x128xf32, #tpu.memory_space<vmem>>, %arg11: memref<1x128xf32, #tpu.memory_space<vmem>>) attributes {dimension_semantics = [#tpu.dimension_semantics<arbitrary>, #tpu.dimension_semantics<arbitrary>], iteration_bounds = array<i64: 2, 1>, scalar_prefetch = 0 : i64, scratch_operands = 5 : i64, tpu.core_type = #tpu.core_type<tc>, window_params = [{transform_indices = @transform_0, window_bounds = array<i64: 32, 256>}, {pipeline_mode = #tpu.pipeline_mode<synchronous>, transform_indices = @transform_1, window_bounds = array<i64: 256, 128>}, {pipeline_mode = #tpu.pipeline_mode<synchronous>, transform_indices = @transform_2, window_bounds = array<i64: 1, 128>}, {pipeline_mode = #tpu.pipeline_mode<synchronous>, transform_indices = @transform_3, window_bounds = array<i64: 1, 128>}, {transform_indices = @transform_4, window_bounds = array<i64: 32, 128>}]} {
    %c32_i32 = arith.constant 32 : i32
    %0 = arith.muli %arg1, %c32_i32 : i32
    %1 = tpu.assume_multiple %0, 32 : i32
    %c0_i32 = arith.constant 0 : i32
    %2 = arith.cmpi eq, %arg0, %c0_i32 : i32
    %c0_i32_0 = arith.constant 0 : i32
    %3 = arith.cmpi eq, %arg1, %c0_i32_0 : i32
    %4 = arith.andi %2, %3 : i1
    %5 = arith.extui %4 : i1 to i32
    %c0_i32_1 = arith.constant 0 : i32
    %6 = arith.cmpi ne, %5, %c0_i32_1 : i32
    scf.if %6 {
      %cst = arith.constant 0.000000e+00 : f32
      %18 = vector.broadcast %cst : f32 to vector<1x128xf32>
      %c0 = arith.constant 0 : index
      %c0_8 = arith.constant 0 : index
      %19 = vector.load %arg8[%c0, %c0_8] : memref<1x128xf32, #tpu.memory_space<vmem>>, vector<1x128xf32>
      tpu.vector_store %arg8[%c0, %c0_8], %18 {strides = array<i32>} : memref<1x128xf32, #tpu.memory_space<vmem>>, vector<1x128xf32>,
      %cst_9 = arith.constant 0.000000e+00 : f32
      %20 = vector.broadcast %cst_9 : f32 to vector<1x128xf32>
      %c0_10 = arith.constant 0 : index
      %c0_11 = arith.constant 0 : index
      %21 = vector.load %arg9[%c0_10, %c0_11] : memref<1x128xf32, #tpu.memory_space<vmem>>, vector<1x128xf32>
      tpu.vector_store %arg9[%c0_10, %c0_11], %20 {strides = array<i32>} : memref<1x128xf32, #tpu.memory_space<vmem>>, vector<1x128xf32>,
    } else {
    }
    %c0_i32_2 = arith.constant 0 : i32
    %7 = arith.cmpi eq, %arg0, %c0_i32_2 : i32
    %8 = arith.extui %7 : i1 to i32
    %c0_i32_3 = arith.constant 0 : i32
    %9 = arith.cmpi ne, %8, %c0_i32_3 : i32
    scf.if %9 {
      %c0 = arith.constant 0 : index
      %c0_8 = arith.constant 0 : index
      %18 = vector.load %arg2[%c0, %c0_8] : memref<32x256xbf16, #tpu.memory_space<vmem>>, vector<32x256xbf16>
      %c0_9 = arith.constant 0 : index
      %c0_10 = arith.constant 0 : index
      %19 = vector.load %arg3[%c0_9, %c0_10] : memref<256x128xbf16, #tpu.memory_space<vmem>>, vector<256x128xbf16>
      %cst = arith.constant dense<0.000000e+00> : vector<32x128xf32>
      %20 = tpu.matmul %18, %19, %cst {dimension_numbers = #tpu.dot_dimension_numbers<[1], [0], [0], [1], [0, 0, 1, 1], [], []>} : vector<32x256xbf16>, vector<256x128xbf16>, vector<32x128xf32> -> vector<32x128xf32>
      %21 = arith.index_cast %1 : i32 to index
      %c0_11 = arith.constant 0 : index
      %22 = vector.load %arg7[%21, %c0_11] : memref<32x128xf32, #tpu.memory_space<vmem>>, vector<32x128xf32>
      tpu.vector_store %arg7[%21, %c0_11], %20 {strides = array<i32>} : memref<32x128xf32, #tpu.memory_space<vmem>>, vector<32x128xf32>,
      %c0_12 = arith.constant 0 : index
      %c0_13 = arith.constant 0 : index
      %23 = vector.load %arg8[%c0_12, %c0_13] : memref<1x128xf32, #tpu.memory_space<vmem>>, vector<1x128xf32>
      %cst_14 = arith.constant dense<0.000000e+00> : vector<128xf32>
      %24 = vector.multi_reduction <add>, %20, %cst_14 [0] : vector<32x128xf32> to vector<128xf32>
      %25 = vector.shape_cast %24 : vector<128xf32> to vector<1x128xf32>
      %26 = arith.addf %23, %25 : vector<1x128xf32>
      %c0_15 = arith.constant 0 : index
      %c0_16 = arith.constant 0 : index
      %27 = vector.load %arg8[%c0_15, %c0_16] : memref<1x128xf32, #tpu.memory_space<vmem>>, vector<1x128xf32>
      tpu.vector_store %arg8[%c0_15, %c0_16], %26 {strides = array<i32>} : memref<1x128xf32, #tpu.memory_space<vmem>>, vector<1x128xf32>,
      %c0_17 = arith.constant 0 : index
      %c0_18 = arith.constant 0 : index
      %28 = vector.load %arg9[%c0_17, %c0_18] : memref<1x128xf32, #tpu.memory_space<vmem>>, vector<1x128xf32>
      %29 = arith.mulf %20, %20 : vector<32x128xf32>
      %cst_19 = arith.constant dense<0.000000e+00> : vector<128xf32>
      %30 = vector.multi_reduction <add>, %29, %cst_19 [0] : vector<32x128xf32> to vector<128xf32>
      %31 = vector.shape_cast %30 : vector<128xf32> to vector<1x128xf32>
      %32 = arith.addf %28, %31 : vector<1x128xf32>
      %c0_20 = arith.constant 0 : index
      %c0_21 = arith.constant 0 : index
      %33 = vector.load %arg9[%c0_20, %c0_21] : memref<1x128xf32, #tpu.memory_space<vmem>>, vector<1x128xf32>
      tpu.vector_store %arg9[%c0_20, %c0_21], %32 {strides = array<i32>} : memref<1x128xf32, #tpu.memory_space<vmem>>, vector<1x128xf32>,
    } else {
    }
    %c1_i32 = arith.constant 1 : i32
    %10 = arith.cmpi eq, %arg0, %c1_i32 : i32
    %c0_i32_4 = arith.constant 0 : i32
    %11 = arith.cmpi eq, %arg1, %c0_i32_4 : i32
    %12 = arith.andi %10, %11 : i1
    %13 = arith.extui %12 : i1 to i32
    %c0_i32_5 = arith.constant 0 : i32
    %14 = arith.cmpi ne, %13, %c0_i32_5 : i32
    scf.if %14 {
      %c0 = arith.constant 0 : index
      %c0_8 = arith.constant 0 : index
      %18 = vector.load %arg8[%c0, %c0_8] : memref<1x128xf32, #tpu.memory_space<vmem>>, vector<1x128xf32>
      %cst = arith.constant 3.125000e-02 : f32
      %19 = vector.broadcast %cst : f32 to vector<1x128xf32>
      %20 = arith.mulf %18, %19 : vector<1x128xf32>
      %c0_9 = arith.constant 0 : index
      %c0_10 = arith.constant 0 : index
      %21 = vector.load %arg9[%c0_9, %c0_10] : memref<1x128xf32, #tpu.memory_space<vmem>>, vector<1x128xf32>
      %cst_11 = arith.constant 3.125000e-02 : f32
      %22 = vector.broadcast %cst_11 : f32 to vector<1x128xf32>
      %23 = arith.mulf %21, %22 : vector<1x128xf32>
      %24 = arith.mulf %20, %20 : vector<1x128xf32>
      %25 = arith.subf %23, %24 : vector<1x128xf32>
      %cst_12 = arith.constant 0.000000e+00 : f32
      %26 = vector.broadcast %cst_12 : f32 to vector<1x128xf32>
      %27 = arith.maximumf %25, %26 : vector<1x128xf32>
      %c0_13 = arith.constant 0 : index
      %c0_14 = arith.constant 0 : index
      %28 = vector.load %arg4[%c0_13, %c0_14] : memref<1x128xf32, #tpu.memory_space<vmem>>, vector<1x128xf32>
      %cst_15 = arith.constant 9.99999974E-6 : f32
      %29 = vector.broadcast %cst_15 : f32 to vector<1x128xf32>
      %30 = arith.addf %27, %29 : vector<1x128xf32>
      %31 = math.rsqrt %30 : vector<1x128xf32>
      %32 = arith.mulf %28, %31 : vector<1x128xf32>
      %c0_16 = arith.constant 0 : index
      %c0_17 = arith.constant 0 : index
      %33 = vector.load %arg10[%c0_16, %c0_17] : memref<1x128xf32, #tpu.memory_space<vmem>>, vector<1x128xf32>
      tpu.vector_store %arg10[%c0_16, %c0_17], %32 {strides = array<i32>} : memref<1x128xf32, #tpu.memory_space<vmem>>, vector<1x128xf32>,
      %c0_18 = arith.constant 0 : index
      %c0_19 = arith.constant 0 : index
      %34 = vector.load %arg5[%c0_18, %c0_19] : memref<1x128xf32, #tpu.memory_space<vmem>>, vector<1x128xf32>
      %35 = arith.mulf %20, %32 : vector<1x128xf32>
      %36 = arith.subf %34, %35 : vector<1x128xf32>
      %c0_20 = arith.constant 0 : index
      %c0_21 = arith.constant 0 : index
      %37 = vector.load %arg11[%c0_20, %c0_21] : memref<1x128xf32, #tpu.memory_space<vmem>>, vector<1x128xf32>
      tpu.vector_store %arg11[%c0_20, %c0_21], %36 {strides = array<i32>} : memref<1x128xf32, #tpu.memory_space<vmem>>, vector<1x128xf32>,
    } else {
    }
    %c1_i32_6 = arith.constant 1 : i32
    %15 = arith.cmpi eq, %arg0, %c1_i32_6 : i32
    %16 = arith.extui %15 : i1 to i32
    %c0_i32_7 = arith.constant 0 : i32
    %17 = arith.cmpi ne, %16, %c0_i32_7 : i32
    scf.if %17 {
      %18 = arith.index_cast %1 : i32 to index
      %c0 = arith.constant 0 : index
      %19 = vector.load %arg7[%18, %c0] : memref<32x128xf32, #tpu.memory_space<vmem>>, vector<32x128xf32>
      %c0_8 = arith.constant 0 : index
      %c0_9 = arith.constant 0 : index
      %20 = vector.load %arg10[%c0_8, %c0_9] : memref<1x128xf32, #tpu.memory_space<vmem>>, vector<1x128xf32>
      %21 = vector.broadcast %20 : vector<1x128xf32> to vector<32x128xf32>
      %22 = arith.mulf %19, %21 : vector<32x128xf32>
      %c0_10 = arith.constant 0 : index
      %c0_11 = arith.constant 0 : index
      %23 = vector.load %arg11[%c0_10, %c0_11] : memref<1x128xf32, #tpu.memory_space<vmem>>, vector<1x128xf32>
      %24 = vector.broadcast %23 : vector<1x128xf32> to vector<32x128xf32>
      %25 = arith.addf %22, %24 : vector<32x128xf32>
      %cst = arith.constant 0.000000e+00 : f32
      %26 = vector.broadcast %cst : f32 to vector<32x128xf32>
      %27 = arith.cmpf oge, %25, %26 : vector<32x128xf32>
      %cst_12 = arith.constant 2.000000e-01 : f32
      %28 = vector.broadcast %cst_12 : f32 to vector<32x128xf32>
      %29 = arith.mulf %28, %25 : vector<32x128xf32>
      %30 = arith.select %27, %25, %29 : vector<32x128xi1>, vector<32x128xf32>
      %31 = arith.truncf %30 : vector<32x128xf32> to vector<32x128xbf16>
      %c0_13 = arith.constant 0 : index
      %c0_14 = arith.constant 0 : index
      %32 = vector.load %arg6[%c0_13, %c0_14] : memref<32x128xbf16, #tpu.memory_space<vmem>>, vector<32x128xbf16>
      tpu.vector_store %arg6[%c0_13, %c0_14], %31 {strides = array<i32>} : memref<32x128xbf16, #tpu.memory_space<vmem>>, vector<32x128xbf16>,
    } else {
    }
    return
  }
  func.func @transform_0(%arg0: i32, %arg1: i32) -> (i32, i32) {
    %c1_i32 = arith.constant 1 : i32
    %0 = arith.subi %c1_i32, %arg0 : i32
    %1 = arith.muli %0, %arg1 : i32
    %c0_i32 = arith.constant 0 : i32
    %c0_i32_0 = arith.constant 0 : i32
    return %1, %c0_i32 : i32, i32
  }
  func.func @transform_1(%arg0: i32, %arg1: i32) -> (i32, i32) {
    %c0_i32 = arith.constant 0 : i32
    %c0_i32_0 = arith.constant 0 : i32
    %c0_i32_1 = arith.constant 0 : i32
    return %c0_i32, %c0_i32_0 : i32, i32
  }
  func.func @transform_2(%arg0: i32, %arg1: i32) -> (i32, i32) {
    %c0_i32 = arith.constant 0 : i32
    %c0_i32_0 = arith.constant 0 : i32
    %c0_i32_1 = arith.constant 0 : i32
    return %c0_i32, %c0_i32_0 : i32, i32
  }
  func.func @transform_3(%arg0: i32, %arg1: i32) -> (i32, i32) {
    %c0_i32 = arith.constant 0 : i32
    %c0_i32_0 = arith.constant 0 : i32
    %c0_i32_1 = arith.constant 0 : i32
    return %c0_i32, %c0_i32_0 : i32, i32
  }
  func.func @transform_4(%arg0: i32, %arg1: i32) -> (i32, i32) {
    %0 = arith.muli %arg0, %arg1 : i32
    %c0_i32 = arith.constant 0 : i32
    %c0_i32_0 = arith.constant 0 : i32
    return %0, %c0_i32 : i32, i32
  }
}

module attributes {stable_mosaic.version = 11 : i64} {
  func.func @_conv_bn_lrelu_kernel(%arg0: i32, %arg1: i32, %arg2: memref<8x384xbf16, #tpu.memory_space<vmem>>, %arg3: memref<384x128xbf16, #tpu.memory_space<vmem>>, %arg4: memref<1x128xf32, #tpu.memory_space<vmem>>, %arg5: memref<1x128xf32, #tpu.memory_space<vmem>>, %arg6: memref<8x128xbf16, #tpu.memory_space<vmem>>, %arg7: memref<8x128xf32, #tpu.memory_space<vmem>>, %arg8: memref<1x128xf32, #tpu.memory_space<vmem>>, %arg9: memref<1x128xf32, #tpu.memory_space<vmem>>, %arg10: memref<1x128xf32, #tpu.memory_space<vmem>>, %arg11: memref<1x128xf32, #tpu.memory_space<vmem>>) attributes {dimension_semantics = [#tpu.dimension_semantics<arbitrary>, #tpu.dimension_semantics<arbitrary>], iteration_bounds = array<i64: 2, 1>, scalar_prefetch = 0 : i64, scratch_operands = 5 : i64, tpu.core_type = #tpu.core_type<tc>, window_params = [{transform_indices = @transform_0, window_bounds = array<i64: 8, 384>}, {pipeline_mode = #tpu.pipeline_mode<synchronous>, transform_indices = @transform_1, window_bounds = array<i64: 384, 128>}, {pipeline_mode = #tpu.pipeline_mode<synchronous>, transform_indices = @transform_2, window_bounds = array<i64: 1, 128>}, {pipeline_mode = #tpu.pipeline_mode<synchronous>, transform_indices = @transform_3, window_bounds = array<i64: 1, 128>}, {transform_indices = @transform_4, window_bounds = array<i64: 8, 128>}]} {
    %c8_i32 = arith.constant 8 : i32
    %0 = arith.muli %arg1, %c8_i32 : i32
    %1 = tpu.assume_multiple %0, 8 : i32
    %c0_i32 = arith.constant 0 : i32
    %2 = arith.cmpi eq, %arg0, %c0_i32 : i32
    %c0_i32_0 = arith.constant 0 : i32
    %3 = arith.cmpi eq, %arg1, %c0_i32_0 : i32
    %4 = arith.andi %2, %3 : i1
    %5 = arith.extui %4 : i1 to i32
    %c0_i32_1 = arith.constant 0 : i32
    %6 = arith.cmpi ne, %5, %c0_i32_1 : i32
    scf.if %6 {
      %cst = arith.constant 0.000000e+00 : f32
      %18 = vector.broadcast %cst : f32 to vector<1x128xf32>
      %c0 = arith.constant 0 : index
      %c0_8 = arith.constant 0 : index
      %19 = vector.load %arg8[%c0, %c0_8] : memref<1x128xf32, #tpu.memory_space<vmem>>, vector<1x128xf32>
      tpu.vector_store %arg8[%c0, %c0_8], %18 {strides = array<i32>} : memref<1x128xf32, #tpu.memory_space<vmem>>, vector<1x128xf32>,
      %cst_9 = arith.constant 0.000000e+00 : f32
      %20 = vector.broadcast %cst_9 : f32 to vector<1x128xf32>
      %c0_10 = arith.constant 0 : index
      %c0_11 = arith.constant 0 : index
      %21 = vector.load %arg9[%c0_10, %c0_11] : memref<1x128xf32, #tpu.memory_space<vmem>>, vector<1x128xf32>
      tpu.vector_store %arg9[%c0_10, %c0_11], %20 {strides = array<i32>} : memref<1x128xf32, #tpu.memory_space<vmem>>, vector<1x128xf32>,
    } else {
    }
    %c0_i32_2 = arith.constant 0 : i32
    %7 = arith.cmpi eq, %arg0, %c0_i32_2 : i32
    %8 = arith.extui %7 : i1 to i32
    %c0_i32_3 = arith.constant 0 : i32
    %9 = arith.cmpi ne, %8, %c0_i32_3 : i32
    scf.if %9 {
      %c0 = arith.constant 0 : index
      %c0_8 = arith.constant 0 : index
      %18 = vector.load %arg2[%c0, %c0_8] : memref<8x384xbf16, #tpu.memory_space<vmem>>, vector<8x384xbf16>
      %c0_9 = arith.constant 0 : index
      %c0_10 = arith.constant 0 : index
      %19 = vector.load %arg3[%c0_9, %c0_10] : memref<384x128xbf16, #tpu.memory_space<vmem>>, vector<384x128xbf16>
      %cst = arith.constant dense<0.000000e+00> : vector<8x128xf32>
      %20 = tpu.matmul %18, %19, %cst {dimension_numbers = #tpu.dot_dimension_numbers<[1], [0], [0], [1], [0, 0, 1, 1], [], []>} : vector<8x384xbf16>, vector<384x128xbf16>, vector<8x128xf32> -> vector<8x128xf32>
      %21 = arith.index_cast %1 : i32 to index
      %c0_11 = arith.constant 0 : index
      %22 = vector.load %arg7[%21, %c0_11] : memref<8x128xf32, #tpu.memory_space<vmem>>, vector<8x128xf32>
      tpu.vector_store %arg7[%21, %c0_11], %20 {strides = array<i32>} : memref<8x128xf32, #tpu.memory_space<vmem>>, vector<8x128xf32>,
      %c0_12 = arith.constant 0 : index
      %c0_13 = arith.constant 0 : index
      %23 = vector.load %arg8[%c0_12, %c0_13] : memref<1x128xf32, #tpu.memory_space<vmem>>, vector<1x128xf32>
      %cst_14 = arith.constant dense<0.000000e+00> : vector<128xf32>
      %24 = vector.multi_reduction <add>, %20, %cst_14 [0] : vector<8x128xf32> to vector<128xf32>
      %25 = vector.shape_cast %24 : vector<128xf32> to vector<1x128xf32>
      %26 = arith.addf %23, %25 : vector<1x128xf32>
      %c0_15 = arith.constant 0 : index
      %c0_16 = arith.constant 0 : index
      %27 = vector.load %arg8[%c0_15, %c0_16] : memref<1x128xf32, #tpu.memory_space<vmem>>, vector<1x128xf32>
      tpu.vector_store %arg8[%c0_15, %c0_16], %26 {strides = array<i32>} : memref<1x128xf32, #tpu.memory_space<vmem>>, vector<1x128xf32>,
      %c0_17 = arith.constant 0 : index
      %c0_18 = arith.constant 0 : index
      %28 = vector.load %arg9[%c0_17, %c0_18] : memref<1x128xf32, #tpu.memory_space<vmem>>, vector<1x128xf32>
      %29 = arith.mulf %20, %20 : vector<8x128xf32>
      %cst_19 = arith.constant dense<0.000000e+00> : vector<128xf32>
      %30 = vector.multi_reduction <add>, %29, %cst_19 [0] : vector<8x128xf32> to vector<128xf32>
      %31 = vector.shape_cast %30 : vector<128xf32> to vector<1x128xf32>
      %32 = arith.addf %28, %31 : vector<1x128xf32>
      %c0_20 = arith.constant 0 : index
      %c0_21 = arith.constant 0 : index
      %33 = vector.load %arg9[%c0_20, %c0_21] : memref<1x128xf32, #tpu.memory_space<vmem>>, vector<1x128xf32>
      tpu.vector_store %arg9[%c0_20, %c0_21], %32 {strides = array<i32>} : memref<1x128xf32, #tpu.memory_space<vmem>>, vector<1x128xf32>,
    } else {
    }
    %c1_i32 = arith.constant 1 : i32
    %10 = arith.cmpi eq, %arg0, %c1_i32 : i32
    %c0_i32_4 = arith.constant 0 : i32
    %11 = arith.cmpi eq, %arg1, %c0_i32_4 : i32
    %12 = arith.andi %10, %11 : i1
    %13 = arith.extui %12 : i1 to i32
    %c0_i32_5 = arith.constant 0 : i32
    %14 = arith.cmpi ne, %13, %c0_i32_5 : i32
    scf.if %14 {
      %c0 = arith.constant 0 : index
      %c0_8 = arith.constant 0 : index
      %18 = vector.load %arg8[%c0, %c0_8] : memref<1x128xf32, #tpu.memory_space<vmem>>, vector<1x128xf32>
      %cst = arith.constant 1.250000e-01 : f32
      %19 = vector.broadcast %cst : f32 to vector<1x128xf32>
      %20 = arith.mulf %18, %19 : vector<1x128xf32>
      %c0_9 = arith.constant 0 : index
      %c0_10 = arith.constant 0 : index
      %21 = vector.load %arg9[%c0_9, %c0_10] : memref<1x128xf32, #tpu.memory_space<vmem>>, vector<1x128xf32>
      %cst_11 = arith.constant 1.250000e-01 : f32
      %22 = vector.broadcast %cst_11 : f32 to vector<1x128xf32>
      %23 = arith.mulf %21, %22 : vector<1x128xf32>
      %24 = arith.mulf %20, %20 : vector<1x128xf32>
      %25 = arith.subf %23, %24 : vector<1x128xf32>
      %cst_12 = arith.constant 0.000000e+00 : f32
      %26 = vector.broadcast %cst_12 : f32 to vector<1x128xf32>
      %27 = arith.maximumf %25, %26 : vector<1x128xf32>
      %c0_13 = arith.constant 0 : index
      %c0_14 = arith.constant 0 : index
      %28 = vector.load %arg4[%c0_13, %c0_14] : memref<1x128xf32, #tpu.memory_space<vmem>>, vector<1x128xf32>
      %cst_15 = arith.constant 9.99999974E-6 : f32
      %29 = vector.broadcast %cst_15 : f32 to vector<1x128xf32>
      %30 = arith.addf %27, %29 : vector<1x128xf32>
      %31 = math.rsqrt %30 : vector<1x128xf32>
      %32 = arith.mulf %28, %31 : vector<1x128xf32>
      %c0_16 = arith.constant 0 : index
      %c0_17 = arith.constant 0 : index
      %33 = vector.load %arg10[%c0_16, %c0_17] : memref<1x128xf32, #tpu.memory_space<vmem>>, vector<1x128xf32>
      tpu.vector_store %arg10[%c0_16, %c0_17], %32 {strides = array<i32>} : memref<1x128xf32, #tpu.memory_space<vmem>>, vector<1x128xf32>,
      %c0_18 = arith.constant 0 : index
      %c0_19 = arith.constant 0 : index
      %34 = vector.load %arg5[%c0_18, %c0_19] : memref<1x128xf32, #tpu.memory_space<vmem>>, vector<1x128xf32>
      %35 = arith.mulf %20, %32 : vector<1x128xf32>
      %36 = arith.subf %34, %35 : vector<1x128xf32>
      %c0_20 = arith.constant 0 : index
      %c0_21 = arith.constant 0 : index
      %37 = vector.load %arg11[%c0_20, %c0_21] : memref<1x128xf32, #tpu.memory_space<vmem>>, vector<1x128xf32>
      tpu.vector_store %arg11[%c0_20, %c0_21], %36 {strides = array<i32>} : memref<1x128xf32, #tpu.memory_space<vmem>>, vector<1x128xf32>,
    } else {
    }
    %c1_i32_6 = arith.constant 1 : i32
    %15 = arith.cmpi eq, %arg0, %c1_i32_6 : i32
    %16 = arith.extui %15 : i1 to i32
    %c0_i32_7 = arith.constant 0 : i32
    %17 = arith.cmpi ne, %16, %c0_i32_7 : i32
    scf.if %17 {
      %18 = arith.index_cast %1 : i32 to index
      %c0 = arith.constant 0 : index
      %19 = vector.load %arg7[%18, %c0] : memref<8x128xf32, #tpu.memory_space<vmem>>, vector<8x128xf32>
      %c0_8 = arith.constant 0 : index
      %c0_9 = arith.constant 0 : index
      %20 = vector.load %arg10[%c0_8, %c0_9] : memref<1x128xf32, #tpu.memory_space<vmem>>, vector<1x128xf32>
      %21 = vector.broadcast %20 : vector<1x128xf32> to vector<8x128xf32>
      %22 = arith.mulf %19, %21 : vector<8x128xf32>
      %c0_10 = arith.constant 0 : index
      %c0_11 = arith.constant 0 : index
      %23 = vector.load %arg11[%c0_10, %c0_11] : memref<1x128xf32, #tpu.memory_space<vmem>>, vector<1x128xf32>
      %24 = vector.broadcast %23 : vector<1x128xf32> to vector<8x128xf32>
      %25 = arith.addf %22, %24 : vector<8x128xf32>
      %cst = arith.constant 0.000000e+00 : f32
      %26 = vector.broadcast %cst : f32 to vector<8x128xf32>
      %27 = arith.cmpf oge, %25, %26 : vector<8x128xf32>
      %cst_12 = arith.constant 2.000000e-01 : f32
      %28 = vector.broadcast %cst_12 : f32 to vector<8x128xf32>
      %29 = arith.mulf %28, %25 : vector<8x128xf32>
      %30 = arith.select %27, %25, %29 : vector<8x128xi1>, vector<8x128xf32>
      %31 = arith.truncf %30 : vector<8x128xf32> to vector<8x128xbf16>
      %c0_13 = arith.constant 0 : index
      %c0_14 = arith.constant 0 : index
      %32 = vector.load %arg6[%c0_13, %c0_14] : memref<8x128xbf16, #tpu.memory_space<vmem>>, vector<8x128xbf16>
      tpu.vector_store %arg6[%c0_13, %c0_14], %31 {strides = array<i32>} : memref<8x128xbf16, #tpu.memory_space<vmem>>, vector<8x128xbf16>,
    } else {
    }
    return
  }
  func.func @transform_0(%arg0: i32, %arg1: i32) -> (i32, i32) {
    %c1_i32 = arith.constant 1 : i32
    %0 = arith.subi %c1_i32, %arg0 : i32
    %1 = arith.muli %0, %arg1 : i32
    %c0_i32 = arith.constant 0 : i32
    %c0_i32_0 = arith.constant 0 : i32
    return %1, %c0_i32 : i32, i32
  }
  func.func @transform_1(%arg0: i32, %arg1: i32) -> (i32, i32) {
    %c0_i32 = arith.constant 0 : i32
    %c0_i32_0 = arith.constant 0 : i32
    %c0_i32_1 = arith.constant 0 : i32
    return %c0_i32, %c0_i32_0 : i32, i32
  }
  func.func @transform_2(%arg0: i32, %arg1: i32) -> (i32, i32) {
    %c0_i32 = arith.constant 0 : i32
    %c0_i32_0 = arith.constant 0 : i32
    %c0_i32_1 = arith.constant 0 : i32
    return %c0_i32, %c0_i32_0 : i32, i32
  }
  func.func @transform_3(%arg0: i32, %arg1: i32) -> (i32, i32) {
    %c0_i32 = arith.constant 0 : i32
    %c0_i32_0 = arith.constant 0 : i32
    %c0_i32_1 = arith.constant 0 : i32
    return %c0_i32, %c0_i32_0 : i32, i32
  }
  func.func @transform_4(%arg0: i32, %arg1: i32) -> (i32, i32) {
    %0 = arith.muli %arg0, %arg1 : i32
    %c0_i32 = arith.constant 0 : i32
    %c0_i32_0 = arith.constant 0 : i32
    return %0, %c0_i32 : i32, i32
  }
}

module attributes {stable_mosaic.version = 11 : i64} {
  func.func @_dense_head_kernel(%arg0: i32, %arg1: memref<8x128xbf16, #tpu.memory_space<vmem>>, %arg2: memref<128x128xbf16, #tpu.memory_space<vmem>>, %arg3: memref<1x128xf32, #tpu.memory_space<vmem>>, %arg4: memref<128x128xbf16, #tpu.memory_space<vmem>>, %arg5: memref<1x128xf32, #tpu.memory_space<vmem>>, %arg6: memref<8x128xf32, #tpu.memory_space<vmem>>) attributes {dimension_semantics = [#tpu.dimension_semantics<arbitrary>], iteration_bounds = array<i64: 1>, scalar_prefetch = 0 : i64, scratch_operands = 0 : i64, tpu.core_type = #tpu.core_type<tc>, window_params = [{pipeline_mode = #tpu.pipeline_mode<synchronous>, transform_indices = @transform_0, window_bounds = array<i64: 8, 128>}, {pipeline_mode = #tpu.pipeline_mode<synchronous>, transform_indices = @transform_1, window_bounds = array<i64: 128, 128>}, {pipeline_mode = #tpu.pipeline_mode<synchronous>, transform_indices = @transform_2, window_bounds = array<i64: 1, 128>}, {pipeline_mode = #tpu.pipeline_mode<synchronous>, transform_indices = @transform_3, window_bounds = array<i64: 128, 128>}, {pipeline_mode = #tpu.pipeline_mode<synchronous>, transform_indices = @transform_4, window_bounds = array<i64: 1, 128>}, {pipeline_mode = #tpu.pipeline_mode<synchronous>, transform_indices = @transform_5, window_bounds = array<i64: 8, 128>}]} {
    %c0 = arith.constant 0 : index
    %c0_0 = arith.constant 0 : index
    %0 = vector.load %arg1[%c0, %c0_0] : memref<8x128xbf16, #tpu.memory_space<vmem>>, vector<8x128xbf16>
    %c0_1 = arith.constant 0 : index
    %c0_2 = arith.constant 0 : index
    %1 = vector.load %arg2[%c0_1, %c0_2] : memref<128x128xbf16, #tpu.memory_space<vmem>>, vector<128x128xbf16>
    %cst = arith.constant dense<0.000000e+00> : vector<8x128xf32>
    %2 = tpu.matmul %0, %1, %cst {dimension_numbers = #tpu.dot_dimension_numbers<[1], [0], [0], [1], [0, 0, 1, 1], [], []>} : vector<8x128xbf16>, vector<128x128xbf16>, vector<8x128xf32> -> vector<8x128xf32>
    %c0_3 = arith.constant 0 : index
    %c0_4 = arith.constant 0 : index
    %3 = vector.load %arg3[%c0_3, %c0_4] : memref<1x128xf32, #tpu.memory_space<vmem>>, vector<1x128xf32>
    %4 = vector.broadcast %3 : vector<1x128xf32> to vector<8x128xf32>
    %5 = arith.addf %2, %4 : vector<8x128xf32>
    %cst_5 = arith.constant 0.000000e+00 : f32
    %6 = vector.broadcast %cst_5 : f32 to vector<8x128xf32>
    %7 = arith.cmpf oge, %5, %6 : vector<8x128xf32>
    %cst_6 = arith.constant 2.000000e-01 : f32
    %8 = vector.broadcast %cst_6 : f32 to vector<8x128xf32>
    %9 = arith.mulf %8, %5 : vector<8x128xf32>
    %10 = arith.select %7, %5, %9 : vector<8x128xi1>, vector<8x128xf32>
    %11 = arith.truncf %10 : vector<8x128xf32> to vector<8x128xbf16>
    %c0_7 = arith.constant 0 : index
    %c0_8 = arith.constant 0 : index
    %12 = vector.load %arg4[%c0_7, %c0_8] : memref<128x128xbf16, #tpu.memory_space<vmem>>, vector<128x128xbf16>
    %cst_9 = arith.constant dense<0.000000e+00> : vector<8x128xf32>
    %13 = tpu.matmul %11, %12, %cst_9 {dimension_numbers = #tpu.dot_dimension_numbers<[1], [0], [0], [1], [0, 0, 1, 1], [], []>} : vector<8x128xbf16>, vector<128x128xbf16>, vector<8x128xf32> -> vector<8x128xf32>
    %c0_10 = arith.constant 0 : index
    %c0_11 = arith.constant 0 : index
    %14 = vector.load %arg5[%c0_10, %c0_11] : memref<1x128xf32, #tpu.memory_space<vmem>>, vector<1x128xf32>
    %15 = vector.broadcast %14 : vector<1x128xf32> to vector<8x128xf32>
    %16 = arith.addf %13, %15 : vector<8x128xf32>
    %cst_12 = arith.constant 0.000000e+00 : f32
    %17 = vector.broadcast %cst_12 : f32 to vector<8x128xf32>
    %18 = arith.subf %17, %16 : vector<8x128xf32>
    %19 = math.exp %18 : vector<8x128xf32>
    %cst_13 = arith.constant 1.000000e+00 : f32
    %20 = vector.broadcast %cst_13 : f32 to vector<8x128xf32>
    %21 = arith.addf %20, %19 : vector<8x128xf32>
    %cst_14 = arith.constant 1.000000e+00 : f32
    %22 = vector.broadcast %cst_14 : f32 to vector<8x128xf32>
    %23 = arith.divf %22, %21 : vector<8x128xf32>
    %c0_15 = arith.constant 0 : index
    %c0_16 = arith.constant 0 : index
    %24 = vector.load %arg6[%c0_15, %c0_16] : memref<8x128xf32, #tpu.memory_space<vmem>>, vector<8x128xf32>
    tpu.vector_store %arg6[%c0_15, %c0_16], %23 {strides = array<i32>} : memref<8x128xf32, #tpu.memory_space<vmem>>, vector<8x128xf32>,
    return
  }
  func.func @transform_0(%arg0: i32) -> (i32, i32) {
    %c0_i32 = arith.constant 0 : i32
    %c0_i32_0 = arith.constant 0 : i32
    %c0_i32_1 = arith.constant 0 : i32
    return %c0_i32, %c0_i32_0 : i32, i32
  }
  func.func @transform_1(%arg0: i32) -> (i32, i32) {
    %c0_i32 = arith.constant 0 : i32
    %c0_i32_0 = arith.constant 0 : i32
    %c0_i32_1 = arith.constant 0 : i32
    return %c0_i32, %c0_i32_0 : i32, i32
  }
  func.func @transform_2(%arg0: i32) -> (i32, i32) {
    %c0_i32 = arith.constant 0 : i32
    %c0_i32_0 = arith.constant 0 : i32
    %c0_i32_1 = arith.constant 0 : i32
    return %c0_i32, %c0_i32_0 : i32, i32
  }
  func.func @transform_3(%arg0: i32) -> (i32, i32) {
    %c0_i32 = arith.constant 0 : i32
    %c0_i32_0 = arith.constant 0 : i32
    %c0_i32_1 = arith.constant 0 : i32
    return %c0_i32, %c0_i32_0 : i32, i32
  }
  func.func @transform_4(%arg0: i32) -> (i32, i32) {
    %c0_i32 = arith.constant 0 : i32
    %c0_i32_0 = arith.constant 0 : i32
    %c0_i32_1 = arith.constant 0 : i32
    return %c0_i32, %c0_i32_0 : i32, i32
  }
  func.func @transform_5(%arg0: i32) -> (i32, i32) {
    %c0_i32 = arith.constant 0 : i32
    %c0_i32_0 = arith.constant 0 : i32
    %c0_i32_1 = arith.constant 0 : i32
    return %c0_i32, %c0_i32_0 : i32, i32
  }
}

</mosaic_0001>

<bundles_post_ra>
// kernel: discriminator_forward.7
= control target key start
LH: loop header
LB: loop body
LE: loop exit
PB: predicated region body
PF: predicated region fallthrough
CT: control target
= control target key end

     0   :  { %s1190_s12 = smov 0   ;;  %s1317_s0 = inlined_call_operand.vmem [shape: bf16[512,128], index: 0, kind: input, shape index: {}]   ;;  %s1318_s1 = inlined_call_operand.vmem [shape: bf16[128,128], index: 1, kind: input, shape index: {}]   ;;  %s1319_s2 = inlined_call_operand.vmem [shape: f32[1,128], index: 2, kind: input, shape index: {}]   ;;  %s1320_s3 = inlined_call_operand.vmem [shape: bf16[512,128], index: 3, kind: output, shape index: {}]  }
   0x1 LB: > { %s847_s13 = sadd.s32 4294967295, %s1168_s12   ;;  %p851_p0 = scmp.ge.s32.totalorder %s1168_s12, 1  ;;  %s1168_s12 = sphi %s1190_s12, %s13_s12  }
   0x2   : > { %p138_p1 = scmp.lt.s32.totalorder %s1168_s12, 3 }
   0x4   : > { %p139_p2 = pnand %p851_p0, %p138_p1 }
   0x5   : > { %v1138_v0 = vld [vmem:[%s1318_s1] sm:$0xff] (!%p139_p2)   ;;  %s852_s16 = sshll.u32 (!%p139_p2), %s847_s13, 5  ;;  %v1139_v1 = vld [vmem:[%s1318_s1 + $0x8] sm:$0xff] (!%p139_p2)   ;;  %v1140_v2 = vld [vmem:[%s1318_s1 + $0x10] sm:$0xff] (!%p139_p2)  }
   0x6   : > { %142 = sbr.rel (%p139_p2) target bundleno = 293 (0x125), region = 32  ;;  %p163_p3 = scmp.lt.s32.totalorder (!%p139_p2), %s852_s16, 63  ;;  %1066 = vmatprep.subr.bf16.mxu0 (!%p139_p2), %v1138_v0  ;;  %1114 = vmatprep.subr.bf16.mxu1 (!%p139_p2), %v1138_v0  ;;  %v1141_v3 = vld [vmem:[%s1318_s1 + $0x18] sm:$0xff] (!%p139_p2)   ;;  %v1142_v6 = vld [vmem:[%s1318_s1 + $0x20] sm:$0xff] (!%p139_p2)   ;;  %v1143_v7 = vld [vmem:[%s1318_s1 + $0x28] sm:$0xff] (!%p139_p2)  }
   0x7   : > { %1067 = vmatpush3.bf16.msra.mxu0 (!%p139_p2), %v1138_v0  ;;  %1122 = vmatpush3.bf16.msra.mxu1 (!%p139_p2), %v1138_v0  ;;  %v1144_v8 = vld [vmem:[%s1318_s1 + $0x30] sm:$0xff] (!%p139_p2)   ;;  %v1145_v9 = vld [vmem:[%s1318_s1 + $0x38] sm:$0xff] (!%p139_p2)   ;;  %v1251_v24 = vld [vmem:[%s1319_s2] ss:$0 sm:$0xff] (!%p139_p2) }
   0x8   : > { %1068 = vmatprep.subr.bf16.mxu0 (!%p139_p2), %v1139_v1  ;;  %1115 = vmatprep.subr.bf16.mxu1 (!%p139_p2), %v1139_v1 }
   0xb   : > { %1069 = vmatpush3.bf16.msra.mxu0 (!%p139_p2), %v1139_v1  ;;  %1123 = vmatpush3.bf16.msra.mxu1 (!%p139_p2), %v1139_v1 }
   0xc   : > { %1070 = vmatprep.subr.bf16.mxu0 (!%p139_p2), %v1140_v2  ;;  %1116 = vmatprep.subr.bf16.mxu1 (!%p139_p2), %v1140_v2 }
   0xd   : > { %s1322_s16 = smov (!%p163_p3, %s852_s16), 63 }
   0xe   : > { %s853_s21 = sshll.u32 %s1322_s16, 2 }
   0xf   : > { %s1215_s24 = scalar_lea.vmem %s1317_s0, %s853_s21  ;;  %1071 = vmatpush3.bf16.msra.mxu0 %v1140_v2  ;;  %1124 = vmatpush3.bf16.msra.mxu1 %v1140_v2  ;;  %s1268_s13 = scalar_lea.vmem %s1320_s3, %s853_s21 }
  0x10   : > { %v1146_v4 = vld [vmem:[%s1215_s24] sm:$0xff]   ;;  %1072 = vmatprep.subr.bf16.mxu0 %v1141_v3  ;;  %1117 = vmatprep.subr.bf16.mxu1 %v1141_v3  ;;  %v1148_v10 = vld [vmem:[%s1215_s24 + $0x8] sm:$0xff]   ;;  %v1150_v12 = vld [vmem:[%s1215_s24 + $0x10] sm:$0xff]  }
  0x11   : > { %v1147_v5 = vld [vmem:[%s1215_s24 + $0x40] sm:$0xff]   ;;  %1082 = vmatprep.mubr.bf16.mxu0 %v1146_v4  ;;  %v1149_v11 = vld [vmem:[%s1215_s24 + $0x48] sm:$0xff]   ;;  %v1151_v13 = vld [vmem:[%s1215_s24 + $0x50] sm:$0xff]  }
  0x12   : > { %1098 = vmatprep.mubr.bf16.mxu1 %v1147_v5  ;;  %v1152_v14 = vld [vmem:[%s1215_s24 + $0x18] sm:$0xff]   ;;  %v1154_v16 = vld [vmem:[%s1215_s24 + $0x20] sm:$0xff]   ;;  %v1156_v18 = vld [vmem:[%s1215_s24 + $0x28] sm:$0xff]  }
  0x13   : > { %1073 = vmatpush3.bf16.msra.mxu0 %v1141_v3  ;;  %1125 = vmatpush3.bf16.msra.mxu1 %v1141_v3  ;;  %v1153_v15 = vld [vmem:[%s1215_s24 + $0x58] sm:$0xff]   ;;  %v1155_v17 = vld [vmem:[%s1215_s24 + $0x60] sm:$0xff]   ;;  %v1157_v19 = vld [vmem:[%s1215_s24 + $0x68] sm:$0xff]  }
  0x14   : > { %1074 = vmatprep.subr.bf16.mxu0 %v1142_v6  ;;  %1118 = vmatprep.subr.bf16.mxu1 %v1142_v6  ;;  %v1158_v20 = vld [vmem:[%s1215_s24 + $0x30] sm:$0xff]   ;;  %v1160_v22 = vld [vmem:[%s1215_s24 + $0x38] sm:$0xff]  }
  0x15   : > { %v1159_v21 = vld [vmem:[%s1215_s24 + $0x70] sm:$0xff]   ;;  %v1161_v23 = vld [vmem:[%s1215_s24 + $0x78] sm:$0xff]  }
  0x17   : > { %1075 = vmatpush3.bf16.msra.mxu0 %v1142_v6  ;;  %1126 = vmatpush3.bf16.msra.mxu1 %v1142_v6 }
  0x18   : > { %1076 = vmatprep.subr.bf16.mxu0 %v1143_v7  ;;  %1119 = vmatprep.subr.bf16.mxu1 %v1143_v7 }
  0x1b   : > { %1077 = vmatpush3.bf16.msra.mxu0 %v1143_v7  ;;  %1127 = vmatpush3.bf16.msra.mxu1 %v1143_v7 }
  0x1c   : > { %1078 = vmatprep.subr.bf16.mxu0 %v1144_v8  ;;  %1120 = vmatprep.subr.bf16.mxu1 %v1144_v8 }
  0x1f   : > { %1079 = vmatpush3.bf16.msra.mxu0 %v1144_v8  ;;  %1128 = vmatpush3.bf16.msra.mxu1 %v1144_v8 }
  0x20   : > { %1080 = vmatprep.subr.bf16.mxu0 %v1145_v9  ;;  %1121 = vmatprep.subr.bf16.mxu1 %v1145_v9 }
  0x23   : > { %1081 = vmatpush3.bf16.msra.mxu0 %v1145_v9  ;;  %1129 = vmatpush3.bf16.msra.mxu1 %v1145_v9 }
  0x26   : > { %1083 = vmatmul.mubr.bf16.vlgmr.msra.gmra.mrb[0].mxu0 %v1148_v10  ;;  %1099 = vmatmul.mubr.bf16.vlgmr.msra.gmra.mrb[0].mxu1 %v1149_v11 }
  0x27   : > { %1086 = vmatprep.mubr.bf16.mxu0 %v1150_v12  ;;  %1102 = vmatprep.mubr.bf16.mxu1 %v1151_v13 }
  0x2e   : > { %1087 = vmatmul.mubr.bf16.gmra.mrb[4].mxu0 %v1152_v14  ;;  %1103 = vmatmul.mubr.bf16.gmra.mrb[4].mxu1 %v1153_v15 }
  0x2f   : > { %1090 = vmatprep.mubr.bf16.mxu0 %v1154_v16  ;;  %1106 = vmatprep.mubr.bf16.mxu1 %v1155_v17 }
  0x36   : > { %1091 = vmatmul.mubr.bf16.gmra.mrb[8].mxu0 %v1156_v18  ;;  %1107 = vmatmul.mubr.bf16.gmra.mrb[8].mxu1 %v1157_v19 }
  0x37   : > { %1094 = vmatprep.mubr.bf16.mxu0 %v1158_v20  ;;  %1110 = vmatprep.mubr.bf16.mxu1 %v1159_v21 }
  0x3e   : > { %1095 = vmatmul.mubr.bf16.gmra.mrb[12].mxu0 %v1160_v22  ;;  %1111 = vmatmul.mubr.bf16.gmra.mrb[12].mxu1 %v1161_v23 }
  0xf9   : > { %v1084_v25 = vpop.f32.mrb[0].mxu0  ;;  %v1100_v26 = vpop.f32.mrb[0].mxu1 }
  0xfa   : > { %v417_v27 = vadd.f32 %v1084_v25, %v1251_v24  ;;  %v481_v28 = vadd.f32 %v1100_v26, %v1251_v24  ;;  %v408_v29 = vpop.f32.mrb[1].mxu0  ;;  %v472_v30 = vpop.f32.mrb[1].mxu1 }
  0xfb   : > { %v409_v31 = vadd.f32 %v1251_v24, %v408_v29  ;;  %v473_v32 = vadd.f32 %v1251_v24, %v472_v30  ;;  %v1085_v33 = vpop.f32.mrb[2].mxu0  ;;  %v1101_v34 = vpop.f32.mrb[2].mxu1 }
  0xfc   : > { %vm537_vm0 = vcmp.ge.f32.partialorder %v417_v27, 0.0  ;;  %v569_v35 = vmul.f32 0.2, %v417_v27  ;;  %vm553_vm1 = vcmp.ge.f32.partialorder %v481_v28, 0.0  ;;  %v585_v36 = vmul.f32 0.2, %v481_v28 }
  0xfd   : > { %vm535_vm2 = vcmp.ge.f32.partialorder %v409_v31, 0.0  ;;  %v567_v37 = vmul.f32 0.2, %v409_v31  ;;  %vm551_vm3 = vcmp.ge.f32.partialorder %v473_v32, 0.0  ;;  %v583_v38 = vmul.f32 0.2, %v473_v32 }
  0xfe   : > { %v420_v39 = vadd.f32 %v1085_v33, %v1251_v24  ;;  %v484_v40 = vadd.f32 %v1101_v34, %v1251_v24  ;;  %v411_v41 = vpop.f32.mrb[3].mxu0  ;;  %v475_v42 = vpop.f32.mrb[3].mxu1  ;;  %v601_v43 = vsel %vm537_vm0, %v417_v27, %v569_v35  ;;  %v617_v44 = vsel %vm553_vm1, %v481_v28, %v585_v36 }
  0xff   : > { %v412_v45 = vadd.f32 %v1251_v24, %v411_v41  ;;  %v476_v46 = vadd.f32 %v1251_v24, %v475_v42  ;;  %v599_v51 = vsel %vm535_vm2, %v409_v31, %v567_v37  ;;  %v615_v52 = vsel %vm551_vm3, %v473_v32, %v583_v38 }
 0x100   : > { %vm538_vm4 = vcmp.ge.f32.partialorder %v420_v39, 0.0  ;;  %v570_v47 = vmul.f32 0.2, %v420_v39  ;;  %vm554_vm5 = vcmp.ge.f32.partialorder %v484_v40, 0.0  ;;  %v586_v48 = vmul.f32 0.2, %v484_v40 }
 0x101   : > { %vm536_vm6 = vcmp.ge.f32.partialorder %v412_v45, 0.0  ;;  %v568_v49 = vmul.f32 0.2, %v412_v45  ;;  %vm552_vm7 = vcmp.ge.f32.partialorder %v476_v46, 0.0  ;;  %v584_v50 = vmul.f32 0.2, %v476_v46 }
 0x102   : > { %v602_v53 = vsel %vm538_vm4, %v420_v39, %v570_v47  ;;  %v618_v54 = vsel %vm554_vm5, %v484_v40, %v586_v48  ;;  %v1088_v55 = vpop.f32.mrb[4].mxu0  ;;  %v1104_v56 = vpop.f32.mrb[4].mxu1 }
 0x103   : > { %v955_v57 = vpack.c.bf16 %v602_v53, %v601_v43  ;;  %v995_v58 = vpack.c.bf16 %v618_v54, %v617_v44  ;;  %v600_v59 = vsel %vm536_vm6, %v412_v45, %v568_v49  ;;  %v616_v60 = vsel %vm552_vm7, %v476_v46, %v584_v50  ;;  %v424_v61 = vpop.f32.mrb[5].mxu0  ;;  %v488_v62 = vpop.f32.mrb[5].mxu1 }
 0x104   : > { %v950_v63 = vpack.c.bf16 %v600_v59, %v599_v51  ;;  %v990_v0 = vpack.c.bf16 %v616_v60, %v615_v52  ;;  %v433_v1 = vadd.f32 %v1088_v55, %v1251_v24  ;;  %v497_v2 = vadd.f32 %v1104_v56, %v1251_v24  ;;  %v1089_v3 = vpop.f32.mrb[6].mxu0  ;;  %v1105_v4 = vpop.f32.mrb[6].mxu1 }
 0x105   : > { %1027 = vst [vmem:[%s1268_s13 + $0x8] sm:$0xff] %v955_v57   ;;  %1035 = vst [vmem:[%s1268_s13 + $0x48] sm:$0xff] %v995_v58   ;;  %v425_v5 = vadd.f32 %v1251_v24, %v424_v61  ;;  %v489_v6 = vadd.f32 %v1251_v24, %v488_v62  ;;  %v436_v7 = vadd.f32 %v1089_v3, %v1251_v24  ;;  %v427_v9 = vpop.f32.mrb[7].mxu0  ;;  %v491_v10 = vpop.f32.mrb[7].mxu1 }
 0x106   : > { %v500_v8 = vadd.f32 %v1105_v4, %v1251_v24  ;;  %951 = vst [vmem:[%s1268_s13] sm:$0xff] %v950_v63   ;;  %1034 = vst [vmem:[%s1268_s13 + $0x40] sm:$0xff] %v990_v0   ;;  %vm541_vm8 = vcmp.ge.f32.partialorder %v433_v1, 0.0  ;;  %v573_v11 = vmul.f32 0.2, %v433_v1  ;;  %vm557_vm9 = vcmp.ge.f32.partialorder %v497_v2, 0.0 }
 0x107   : > { %v589_v12 = vmul.f32 0.2, %v497_v2  ;;  %vm539_vm10 = vcmp.ge.f32.partialorder %v425_v5, 0.0  ;;  %v571_v13 = vmul.f32 0.2, %v425_v5  ;;  %vm555_vm11 = vcmp.ge.f32.partialorder %v489_v6, 0.0 }
 0x108   : > { %v605_v14 = vsel %vm541_vm8, %v433_v1, %v573_v11  ;;  %v587_v15 = vmul.f32 0.2, %v489_v6  ;;  %vm542_vm12 = vcmp.ge.f32.partialorder %v436_v7, 0.0  ;;  %v574_v16 = vmul.f32 0.2, %v436_v7 }
 0x109   : > { %v621_v17 = vsel %vm557_vm9, %v497_v2, %v589_v12  ;;  %v603_v18 = vsel %vm539_vm10, %v425_v5, %v571_v13  ;;  %vm558_vm13 = vcmp.ge.f32.partialorder %v500_v8, 0.0  ;;  %v590_v19 = vmul.f32 0.2, %v500_v8  ;;  %v1092_v20 = vpop.f32.mrb[8].mxu0  ;;  %v1108_v21 = vpop.f32.mrb[8].mxu1 }
 0x10a   : > { %v606_v22 = vsel %vm542_vm12, %v436_v7, %v574_v16  ;;  %v428_v23 = vadd.f32 %v1251_v24, %v427_v9  ;;  %v492_v25 = vadd.f32 %v1251_v24, %v491_v10  ;;  %v449_v26 = vadd.f32 %v1092_v20, %v1251_v24  ;;  %v440_v27 = vpop.f32.mrb[9].mxu0  ;;  %v504_v28 = vpop.f32.mrb[9].mxu1 }
 0x10b   : > { %v965_v29 = vpack.c.bf16 %v606_v22, %v605_v14  ;;  %v622_v30 = vsel %vm558_vm13, %v500_v8, %v590_v19  ;;  %v513_v31 = vadd.f32 %v1108_v21, %v1251_v24  ;;  %v441_v32 = vadd.f32 %v1251_v24, %v440_v27  ;;  %v1093_v33 = vpop.f32.mrb[10].mxu0  ;;  %v1109_v34 = vpop.f32.mrb[10].mxu1 }
 0x10c   : > { %v1005_v35 = vpack.c.bf16 %v622_v30, %v621_v17  ;;  %vm540_vm14 = vcmp.ge.f32.partialorder %v428_v23, 0.0  ;;  %v572_v36 = vmul.f32 0.2, %v428_v23  ;;  %vm556_vm15 = vcmp.ge.f32.partialorder %v492_v25, 0.0  ;;  %v443_v37 = vpop.f32.mrb[11].mxu0  ;;  %v507_v38 = vpop.f32.mrb[11].mxu1 }
 0x10d   : > { %1029 = vst [vmem:[%s1268_s13 + $0x18] sm:$0xff] %v965_v29   ;;  %v588_v39 = vmul.f32 0.2, %v492_v25  ;;  %vm545_vm0 = vcmp.ge.f32.partialorder %v449_v26, 0.0  ;;  %v577_v40 = vmul.f32 0.2, %v449_v26  ;;  %v619_v41 = vsel %vm555_vm11, %v489_v6, %v587_v15 }
 0x10e   : > { %vm561_vm1 = vcmp.ge.f32.partialorder %v513_v31, 0.0  ;;  %1037 = vst [vmem:[%s1268_s13 + $0x58] sm:$0xff] %v1005_v35   ;;  %v604_v42 = vsel %vm540_vm14, %v428_v23, %v572_v36  ;;  %v593_v43 = vmul.f32 0.2, %v513_v31  ;;  %vm543_vm2 = vcmp.ge.f32.partialorder %v441_v32, 0.0 }
 0x10f   : > { %v960_v44 = vpack.c.bf16 %v604_v42, %v603_v18  ;;  %v620_v45 = vsel %vm556_vm15, %v492_v25, %v588_v39  ;;  %v575_v46 = vmul.f32 0.2, %v441_v32  ;;  %v505_v47 = vadd.f32 %v1251_v24, %v504_v28 }
 0x110   : > { %v1000_v48 = vpack.c.bf16 %v620_v45, %v619_v41  ;;  %v609_v49 = vsel %vm545_vm0, %v449_v26, %v577_v40  ;;  %v625_v50 = vsel %vm561_vm1, %v513_v31, %v593_v43  ;;  %v452_v51 = vadd.f32 %v1093_v33, %v1251_v24 }
 0x111   : > { %1028 = vst [vmem:[%s1268_s13 + $0x10] sm:$0xff] %v960_v44   ;;  %vm559_vm3 = vcmp.ge.f32.partialorder %v505_v47, 0.0  ;;  %v591_v52 = vmul.f32 0.2, %v505_v47  ;;  %v516_v53 = vadd.f32 %v1109_v34, %v1251_v24  ;;  %v444_v54 = vadd.f32 %v1251_v24, %v443_v37  ;;  %v1096_v55 = vpop.f32.mrb[12].mxu0  ;;  %v1112_v56 = vpop.f32.mrb[12].mxu1 }
 0x112   : > { %1036 = vst [vmem:[%s1268_s13 + $0x50] sm:$0xff] %v1000_v48   ;;  %vm546_vm4 = vcmp.ge.f32.partialorder %v452_v51, 0.0  ;;  %v578_v57 = vmul.f32 0.2, %v452_v51  ;;  %v508_v58 = vadd.f32 %v1251_v24, %v507_v38  ;;  %v465_v59 = vadd.f32 %v1096_v55, %v1251_v24  ;;  %v456_v60 = vpop.f32.mrb[13].mxu0  ;;  %v520_v61 = vpop.f32.mrb[13].mxu1 }
 0x113   : > { %v607_v62 = vsel %vm543_vm2, %v441_v32, %v575_v46  ;;  %vm562_vm5 = vcmp.ge.f32.partialorder %v516_v53, 0.0  ;;  %v594_v63 = vmul.f32 0.2, %v516_v53  ;;  %vm544_vm6 = vcmp.ge.f32.partialorder %v444_v54, 0.0  ;;  %v1097_v0 = vpop.f32.mrb[14].mxu0  ;;  %v1113_v1 = vpop.f32.mrb[14].mxu1 }
 0x114   : > { %v610_v2 = vsel %vm546_vm4, %v452_v51, %v578_v57  ;;  %v576_v3 = vmul.f32 0.2, %v444_v54  ;;  %vm560_vm7 = vcmp.ge.f32.partialorder %v508_v58, 0.0  ;;  %v592_v4 = vmul.f32 0.2, %v508_v58  ;;  %v459_v5 = vpop.f32.mrb[15].mxu0 }
 0x115   : > { %v623_v6 = vsel %vm559_vm3, %v505_v47, %v591_v52  ;;  %v975_v7 = vpack.c.bf16 %v610_v2, %v609_v49  ;;  %v626_v8 = vsel %vm562_vm5, %v516_v53, %v594_v63  ;;  %v581_v9 = vmul.f32 0.2, %v465_v59  ;;  %v523_v10 = vpop.f32.mrb[15].mxu1 }
 0x116   : > { %v1015_v11 = vpack.c.bf16 %v626_v8, %v625_v50  ;;  %v608_v12 = vsel %vm544_vm6, %v444_v54, %v576_v3  ;;  %v624_v13 = vsel %vm560_vm7, %v508_v58, %v592_v4  ;;  %v529_v14 = vadd.f32 %v1112_v56, %v1251_v24 }
 0x117   : > { %1031 = vst [vmem:[%s1268_s13 + $0x28] sm:$0xff] %v975_v7   ;;  %v970_v15 = vpack.c.bf16 %v608_v12, %v607_v62  ;;  %v1010_v16 = vpack.c.bf16 %v624_v13, %v623_v6  ;;  %vm549_vm8 = vcmp.ge.f32.partialorder %v465_v59, 0.0  ;;  %v457_v17 = vadd.f32 %v1251_v24, %v456_v60 }
 0x118   : > { %1039 = vst [vmem:[%s1268_s13 + $0x68] sm:$0xff] %v1015_v11   ;;  %vm565_vm9 = vcmp.ge.f32.partialorder %v529_v14, 0.0  ;;  %v597_v18 = vmul.f32 0.2, %v529_v14  ;;  %v521_v19 = vadd.f32 %v1251_v24, %v520_v61  ;;  %v468_v20 = vadd.f32 %v1097_v0, %v1251_v24 }
 0x119   : > { %1030 = vst [vmem:[%s1268_s13 + $0x20] sm:$0xff] %v970_v15   ;;  %1038 = vst [vmem:[%s1268_s13 + $0x60] sm:$0xff] %v1010_v16   ;;  %v579_v21 = vmul.f32 0.2, %v457_v17  ;;  %v532_v22 = vadd.f32 %v1113_v1, %v1251_v24  ;;  %v460_v23 = vadd.f32 %v1251_v24, %v459_v5  ;;  %v613_v25 = vsel %vm549_vm8, %v465_v59, %v581_v9 }
 0x11a   : > { %vm547_vm10 = vcmp.ge.f32.partialorder %v457_v17, 0.0  ;;  %vm550_vm11 = vcmp.ge.f32.partialorder %v468_v20, 0.0  ;;  %v629_v26 = vsel %vm565_vm9, %v529_v14, %v597_v18  ;;  %v582_v27 = vmul.f32 0.2, %v468_v20 }
 0x11b   : > { %vm566_vm12 = vcmp.ge.f32.partialorder %v532_v22, 0.0  ;;  %v598_v28 = vmul.f32 0.2, %v532_v22  ;;  %vm563_vm13 = vcmp.ge.f32.partialorder %v521_v19, 0.0  ;;  %vm548_vm14 = vcmp.ge.f32.partialorder %v460_v23, 0.0 }
 0x11c   : > { %v580_v29 = vmul.f32 0.2, %v460_v23  ;;  %v524_v30 = vadd.f32 %v1251_v24, %v523_v10  ;;  %v611_v31 = vsel %vm547_vm10, %v457_v17, %v579_v21  ;;  %v595_v32 = vmul.f32 0.2, %v521_v19 }
 0x11d   : > { %v614_v33 = vsel %vm550_vm11, %v468_v20, %v582_v27  ;;  %v630_v34 = vsel %vm566_vm12, %v532_v22, %v598_v28 }
 0x11e   : > { %v985_v35 = vpack.c.bf16 %v614_v33, %v613_v25  ;;  %v1025_v36 = vpack.c.bf16 %v630_v34, %v629_v26  ;;  %v612_v37 = vsel %vm548_vm14, %v460_v23, %v580_v29  ;;  %vm564_vm15 = vcmp.ge.f32.partialorder %v524_v30, 0.0 }
 0x11f   : > { %v980_v38 = vpack.c.bf16 %v612_v37, %v611_v31  ;;  %v596_v39 = vmul.f32 0.2, %v524_v30  ;;  %v627_v40 = vsel %vm563_vm13, %v521_v19, %v595_v32 }
 0x120   : > { %1033 = vst [vmem:[%s1268_s13 + $0x38] sm:$0xff] %v985_v35   ;;  %1041 = vst [vmem:[%s1268_s13 + $0x78] sm:$0xff] %v1025_v36  }
 0x121   : > { %1032 = vst [vmem:[%s1268_s13 + $0x30] sm:$0xff] %v980_v38   ;;  %v628_v41 = vsel %vm564_vm15, %v524_v30, %v596_v39 }
 0x122   : > { %v1020_v42 = vpack.c.bf16 %v628_v41, %v627_v40 }
 0x124   : > { %1040 = vst [vmem:[%s1268_s13 + $0x70] sm:$0xff] %v1020_v42  }
 0x125 PF: > { %s13_s12 = sadd.s32 1, %s1168_s12  }
 0x126   : > { %p10_p4 = scmp.ge.s32.totalorder %s13_s12, 4  }
 0x128   :  { %12 = sbr.rel (!%p10_p4) target bundleno = 1 (0x1), region = 62 }

// kernel: discriminator_forward.8
= control target key start
LH: loop header
LB: loop body
LE: loop exit
PB: predicated region body
PF: predicated region fallthrough
CT: control target
= control target key end

     0   :  { %s1108_s15 = smov 0   ;;  %s1110_s16 = smov 0   ;;  %s1255_s0 = inlined_call_operand.vmem [shape: bf16[128,128], index: 0, kind: input, shape index: {}]   ;;  %s1256_s1 = inlined_call_operand.vmem [shape: bf16[128,128], index: 1, kind: input, shape index: {}]   ;;  %s1257_s2 = inlined_call_operand.vmem [shape: f32[1,128], index: 2, kind: input, shape index: {}]   ;;  %s1258_s3 = inlined_call_operand.vmem [shape: f32[1,128], index: 3, kind: input, shape index: {}]   ;;  %s1259_s4 = inlined_call_operand.vmem [shape: bf16[128,128], index: 4, kind: output, shape index: {}]  }
   0x1   :  { %s1112_s17 = smov 0  }
   0x2 LB: > { %s26_s18 = sadd.s32 1, %s1076_s16  ;;  %p843_p0 = scmp.ge.s32.totalorder %s1080_s17, 1  ;;  %s1080_s17 = sphi %s1112_s17, %s14_s17   ;;  %s1076_s16 = sphi %s1110_s16, %s1261_s16   ;;  %s1072_s15 = sphi %s1108_s15, %s1260_s15  }
   0x3   : > { %p28_p1 = scmp.ge.s32.totalorder %s26_s18, 2  ;;  %p185_p2 = scmp.lt.s32.totalorder %s1080_s17, 3 }
   0x5   : > { %s1263_s18 = smov (%p28_p1, %s26_s18), 0  ;;  %p186_p3 = pnand %p843_p0, %p185_p2 }
   0x6   : > { %p234_p4 = scmp.eq.s32.totalorder (!%p186_p3), %s1072_s15, 0 }
   0x7   : > { %189 = sbr.rel (%p186_p3) target bundleno = 381 (0x17d), region = 36 }
   0xe   : > { %239 = sbr.rel (!%p234_p4) target bundleno = 21 (0x15), region = 40  ;;  %v1082_v0 = vmov (%p234_p4), 0.0  }
   0xf   : > { %240 = vst [vmem:[#allocation3] sm:$0x1] (%p234_p4), %v1082_v0  ;;  %241 = vst [vmem:[#allocation4] sm:$0x1] (%p234_p4), %v1082_v0 }
  0x15 PF: > { %p845_p5 = scmp.ne.s32.totalorder %s1072_s15, 0 }
  0x16   : > { %v1040_v1 = vld [vmem:[%s1256_s1] sm:$0xff] (!%p845_p5)   ;;  %v1041_v2 = vld [vmem:[%s1256_s1 + $0x8] sm:$0xff] (!%p845_p5)   ;;  %v1042_v3 = vld [vmem:[%s1256_s1 + $0x10] sm:$0xff] (!%p845_p5)  }
  0x17   : > { %244 = sbr.rel (%p845_p5) target bundleno = 317 (0x13d), region = 44  ;;  %967 = vmatprep.subr.bf16.mxu0 (!%p845_p5), %v1040_v1  ;;  %999 = vmatprep.subr.bf16.mxu1 (!%p845_p5), %v1040_v1  ;;  %v1043_v4 = vld [vmem:[%s1256_s1 + $0x18] sm:$0xff] (!%p845_p5)   ;;  %v1048_v5 = vld [vmem:[%s1255_s0] sm:$0xff] (!%p845_p5)   ;;  %v1045_v8 = vld [vmem:[%s1256_s1 + $0x28] sm:$0xff] (!%p845_p5)  }
  0x18   : > { %968 = vmatpush3.bf16.msra.mxu0 (!%p845_p5), %v1040_v1  ;;  %1007 = vmatpush3.bf16.msra.mxu1 (!%p845_p5), %v1040_v1  ;;  %v1044_v6 = vld [vmem:[%s1256_s1 + $0x20] sm:$0xff] (!%p845_p5)   ;;  %v1046_v9 = vld [vmem:[%s1256_s1 + $0x30] sm:$0xff] (!%p845_p5)   ;;  %v1047_v10 = vld [vmem:[%s1256_s1 + $0x38] sm:$0xff] (!%p845_p5)  }
  0x19   : > { %969 = vmatprep.subr.bf16.mxu0 (!%p845_p5), %v1041_v2  ;;  %1000 = vmatprep.subr.bf16.mxu1 (!%p845_p5), %v1041_v2  ;;  %v1052_v7 = vld [vmem:[%s1255_s0 + $0x20] sm:$0xff] (!%p845_p5)   ;;  %v1049_v11 = vld [vmem:[%s1255_s0 + $0x8] sm:$0xff] (!%p845_p5)   ;;  %v1050_v13 = vld [vmem:[%s1255_s0 + $0x10] sm:$0xff] (!%p845_p5)  }
  0x1a   : > { %983 = vmatprep.mubr.bf16.mxu0 (!%p845_p5), %v1048_v5  ;;  %991 = vmatprep.mubr.bf16.mxu1 (!%p845_p5), %v1052_v7  ;;  %v1053_v12 = vld [vmem:[%s1255_s0 + $0x28] sm:$0xff] (!%p845_p5)   ;;  %v1054_v14 = vld [vmem:[%s1255_s0 + $0x30] sm:$0xff] (!%p845_p5)   ;;  %v1051_v15 = vld [vmem:[%s1255_s0 + $0x18] sm:$0xff] (!%p845_p5)  }
  0x1b   : > { %v1055_v16 = vld [vmem:[%s1255_s0 + $0x38] sm:$0xff] (!%p845_p5)  }
  0x1c   : > { %970 = vmatpush3.bf16.msra.mxu0 (!%p845_p5), %v1041_v2  ;;  %1008 = vmatpush3.bf16.msra.mxu1 (!%p845_p5), %v1041_v2 }
  0x1d   : > { %971 = vmatprep.subr.bf16.mxu0 (!%p845_p5), %v1042_v3  ;;  %1001 = vmatprep.subr.bf16.mxu1 (!%p845_p5), %v1042_v3 }
  0x20   : > { %972 = vmatpush3.bf16.msra.mxu0 %v1042_v3  ;;  %1009 = vmatpush3.bf16.msra.mxu1 %v1042_v3 }
  0x21   : > { %973 = vmatprep.subr.bf16.mxu0 %v1043_v4  ;;  %1002 = vmatprep.subr.bf16.mxu1 %v1043_v4 }
  0x24   : > { %974 = vmatpush3.bf16.msra.mxu0 %v1043_v4  ;;  %1010 = vmatpush3.bf16.msra.mxu1 %v1043_v4 }
  0x25   : > { %975 = vmatprep.subr.bf16.mxu0 %v1044_v6  ;;  %1003 = vmatprep.subr.bf16.mxu1 %v1044_v6 }
  0x28   : > { %976 = vmatpush3.bf16.msra.mxu0 %v1044_v6  ;;  %1011 = vmatpush3.bf16.msra.mxu1 %v1044_v6 }
  0x29   : > { %977 = vmatprep.subr.bf16.mxu0 %v1045_v8  ;;  %1004 = vmatprep.subr.bf16.mxu1 %v1045_v8 }
  0x2c   : > { %978 = vmatpush3.bf16.msra.mxu0 %v1045_v8  ;;  %1012 = vmatpush3.bf16.msra.mxu1 %v1045_v8 }
  0x2d   : > { %979 = vmatprep.subr.bf16.mxu0 %v1046_v9  ;;  %1005 = vmatprep.subr.bf16.mxu1 %v1046_v9 }
  0x30   : > { %980 = vmatpush3.bf16.msra.mxu0 %v1046_v9  ;;  %1013 = vmatpush3.bf16.msra.mxu1 %v1046_v9 }
  0x31   : > { %981 = vmatprep.subr.bf16.mxu0 %v1047_v10  ;;  %1006 = vmatprep.subr.bf16.mxu1 %v1047_v10 }
  0x34   : > { %982 = vmatpush3.bf16.msra.mxu0 %v1047_v10  ;;  %1014 = vmatpush3.bf16.msra.mxu1 %v1047_v10 }
  0x37   : > { %984 = vmatmul.mubr.bf16.vlgmr.msra.gmra.mrb[0].mxu0 %v1049_v11  ;;  %992 = vmatmul.mubr.bf16.vlgmr.msra.gmra.mrb[0].mxu1 %v1053_v12 }
  0x38   : > { %987 = vmatprep.mubr.bf16.mxu0 %v1050_v13  ;;  %995 = vmatprep.mubr.bf16.mxu1 %v1054_v14 }
  0x3f   : > { %988 = vmatmul.mubr.bf16.gmra.mrb[4].mxu0 %v1051_v15  ;;  %996 = vmatmul.mubr.bf16.gmra.mrb[4].mxu1 %v1055_v16 }
 0x10a   : > { %v985_v17 = vpop.f32.mrb[0].mxu0  ;;  %v993_v18 = vpop.f32.mrb[0].mxu1 }
 0x10b   : > { %473 = vst [vmem:[#allocation2 + $0x10] sm:$0xff] %v985_v17  ;;  %v407_v19 = vpop.f32.mrb[1].mxu0  ;;  %481 = vst [vmem:[#allocation2 + $0x50] sm:$0xff] %v993_v18  ;;  %v439_v20 = vpop.f32.mrb[1].mxu1  ;;  %v514_v28 = vmul.f32 %v985_v17, %v985_v17  ;;  %v522_v60 = vmul.f32 %v993_v18, %v993_v18 }
 0x10c   : > { %471 = vst [vmem:[#allocation2] sm:$0xff] %v407_v19  ;;  %v986_v21 = vpop.f32.mrb[2].mxu0  ;;  %479 = vst [vmem:[#allocation2 + $0x40] sm:$0xff] %v439_v20  ;;  %v994_v22 = vpop.f32.mrb[2].mxu1  ;;  %v512_v25 = vmul.f32 %v407_v19, %v407_v19  ;;  %v520_v54 = vmul.f32 %v439_v20, %v439_v20 }
 0x10d   : > { %474 = vst [vmem:[#allocation2 + $0x18] sm:$0xff] %v986_v21  ;;  %v410_v23 = vpop.f32.mrb[3].mxu0  ;;  %482 = vst [vmem:[#allocation2 + $0x58] sm:$0xff] %v994_v22  ;;  %v442_v24 = vpop.f32.mrb[3].mxu1  ;;  %v515_v31 = vmul.f32 %v986_v21, %v986_v21  ;;  %v523_v63 = vmul.f32 %v994_v22, %v994_v22 }
 0x10e   : > { %472 = vst [vmem:[#allocation2 + $0x8] sm:$0xff] %v410_v23  ;;  %v488_v26 = vadd.f32 %v410_v23, %v407_v19  ;;  %v513_v27 = vmul.f32 %v410_v23, %v410_v23  ;;  %480 = vst [vmem:[#allocation2 + $0x48] sm:$0xff] %v442_v24  ;;  %v521_v59 = vmul.f32 %v442_v24, %v442_v24 }
 0x110   : > { %v489_v29 = vadd.f32 %v985_v17, %v488_v26  ;;  %v528_v30 = vadd.f32 %v513_v27, %v512_v25  ;;  %v511_v27 = vld [vmem:[#allocation4] sm:$0x1] }
 0x112   : > { %v529_v32 = vadd.f32 %v528_v30, %v514_v28  ;;  %v989_v33 = vpop.f32.mrb[4].mxu0  ;;  %v490_v34 = vadd.f32 %v986_v21, %v489_v29  ;;  %v997_v35 = vpop.f32.mrb[4].mxu1 }
 0x113   : > { %477 = vst [vmem:[#allocation2 + $0x30] sm:$0xff] %v989_v33  ;;  %v423_v36 = vpop.f32.mrb[5].mxu0  ;;  %485 = vst [vmem:[#allocation2 + $0x70] sm:$0xff] %v997_v35  ;;  %v455_v37 = vpop.f32.mrb[5].mxu1  ;;  %v518_v48 = vmul.f32 %v989_v33, %v989_v33  ;;  %v526_v8 = vmul.f32 %v997_v35, %v997_v35 }
 0x114   : > { %475 = vst [vmem:[#allocation2 + $0x20] sm:$0xff] %v423_v36  ;;  %v491_v38 = vadd.f32 %v490_v34, %v423_v36  ;;  %v516_v39 = vmul.f32 %v423_v36, %v423_v36  ;;  %v530_v40 = vadd.f32 %v529_v32, %v515_v31  ;;  %v990_v41 = vpop.f32.mrb[6].mxu0  ;;  %483 = vst [vmem:[#allocation2 + $0x60] sm:$0xff] %v455_v37  ;;  %v998_v42 = vpop.f32.mrb[6].mxu1 }
 0x115   : > { %478 = vst [vmem:[#allocation2 + $0x38] sm:$0xff] %v990_v41  ;;  %v426_v43 = vpop.f32.mrb[7].mxu0  ;;  %486 = vst [vmem:[#allocation2 + $0x78] sm:$0xff] %v998_v42  ;;  %v458_v44 = vpop.f32.mrb[7].mxu1  ;;  %v519_v51 = vmul.f32 %v990_v41, %v990_v41  ;;  %v524_v2 = vmul.f32 %v455_v37, %v455_v37  ;;  %v527_v11 = vmul.f32 %v998_v42, %v998_v42 }
 0x116   : > { %v531_v45 = vadd.f32 %v530_v40, %v516_v39  ;;  %476 = vst [vmem:[#allocation2 + $0x28] sm:$0xff] %v426_v43  ;;  %v492_v46 = vadd.f32 %v491_v38, %v426_v43  ;;  %v517_v47 = vmul.f32 %v426_v43, %v426_v43  ;;  %484 = vst [vmem:[#allocation2 + $0x68] sm:$0xff] %v458_v44 }
 0x117   : > { %v525_v7 = vmul.f32 %v458_v44, %v458_v44 }
 0x118   : > { %v493_v49 = vadd.f32 %v989_v33, %v492_v46  ;;  %v532_v50 = vadd.f32 %v531_v45, %v517_v47 }
 0x11a   : > { %v533_v52 = vadd.f32 %v532_v50, %v518_v48  ;;  %v494_v53 = vadd.f32 %v990_v41, %v493_v49 }
 0x11c   : > { %v495_v55 = vadd.f32 %v494_v53, %v439_v20  ;;  %v534_v56 = vadd.f32 %v533_v52, %v519_v51 }
 0x11e   : > { %v535_v57 = vadd.f32 %v534_v56, %v520_v54  ;;  %v496_v58 = vadd.f32 %v495_v55, %v442_v24  ;;  %v487_v24 = vld [vmem:[#allocation3] sm:$0x1] }
 0x120   : > { %v497_v61 = vadd.f32 %v993_v18, %v496_v58  ;;  %v536_v62 = vadd.f32 %v535_v57, %v521_v59 }
 0x122   : > { %v537_v0 = vadd.f32 %v536_v62, %v522_v60  ;;  %v498_v1 = vadd.f32 %v994_v22, %v497_v61 }
 0x124   : > { %v499_v3 = vadd.f32 %v498_v1, %v455_v37  ;;  %v538_v4 = vadd.f32 %v537_v0, %v523_v63 }
 0x126   : > { %v539_v5 = vadd.f32 %v538_v4, %v524_v2  ;;  %v500_v6 = vadd.f32 %v499_v3, %v458_v44 }
 0x128   : > { %v501_v9 = vadd.f32 %v997_v35, %v500_v6  ;;  %v540_v10 = vadd.f32 %v539_v5, %v525_v7 }
 0x12a   : > { %v502_v12 = vadd.f32 %v998_v42, %v501_v9  ;;  %v541_v13 = vadd.f32 %v540_v10, %v526_v8 }
 0x12c   : > { %v503_v14 = vrot.slane %v502_v12, 4  ;;  %v542_v15 = vadd.f32 %v541_v13, %v527_v11 }
 0x12e   : > { %v504_v16 = vadd.f32 %v503_v14, %v502_v12  ;;  %v543_v17 = vrot.slane %v542_v15, 4 }
 0x130   : > { %v505_v18 = vrot.slane %v504_v16, 2  ;;  %v544_v19 = vadd.f32 %v543_v17, %v542_v15 }
 0x132   : > { %v506_v20 = vadd.f32 %v505_v18, %v504_v16  ;;  %v545_v21 = vrot.slane %v544_v19, 2 }
 0x134   : > { %v507_v22 = vrot.slane %v506_v20, 1  ;;  %v546_v23 = vadd.f32 %v545_v21, %v544_v19 }
 0x136   : > { %v508_v25 = vadd.f32 %v507_v22, %v506_v20  ;;  %v547_v26 = vrot.slane %v546_v23, 1 }
 0x138   : > { %v509_v28 = vadd.f32 %v508_v25, %v487_v24  ;;  %v548_v29 = vadd.f32 %v547_v26, %v546_v23 }
 0x13a   : > { %510 = vst [vmem:[#allocation3] sm:$0x1] %v509_v28  ;;  %v549_v30 = vadd.f32 %v548_v29, %v511_v27 }
 0x13c   : > { %550 = vst [vmem:[#allocation4] sm:$0x1] %v549_v30 }
 0x13d PF: > { %p551_p6 = scmp.eq.s32.totalorder %s1072_s15, 1 }
 0x13e   : > { %v563_v39 = vld [vmem:[%s1257_s2] sm:$0x1] (%p551_p6) }
 0x13f   : > { %555 = sbr.rel (!%p551_p6) target bundleno = 350 (0x15e), region = 48  ;;  %v568_v42 = vld [vmem:[%s1258_s3] sm:$0x1] (%p551_p6) }
 0x141   : > { %v556_v31 = vld [vmem:[#allocation3] sm:$0x1] (%p551_p6) }
 0x142   : > { %v557_v33 = vmul.f32 (%p551_p6), 0.0078125, %v556_v31 }
 0x143   : > { %v558_v32 = vld [vmem:[#allocation4] sm:$0x1] (%p551_p6) }
 0x144   : > { %v559_v34 = vmul.f32 (%p551_p6), 0.0078125, %v558_v32  ;;  %v560_v35 = vmul.f32 (%p551_p6), %v557_v33, %v557_v33 }
 0x146   : > { %v561_v36 = vsub.f32 %v559_v34, %v560_v35 }
 0x148   : > { %v562_v37 = vmax.f32 %v561_v36, 0.0 }
 0x14a   : > { %v564_v38 = vadd.f32 1e-05, %v562_v37 }
 0x14c   : > { %1056 = vrsqrt.f32 %v564_v38 }
 0x156   : > { %v1057_v40 = vpop.eup %1056 }
 0x157   : > { %v566_v41 = vmul.f32 %v1057_v40, %v563_v39 }
 0x159   : > { %567 = vst [vmem:[#allocation5] sm:$0x1] %v566_v41  ;;  %v569_v43 = vmul.f32 %v566_v41, %v557_v33 }
 0x15b   : > { %v570_v44 = vsub.f32 %v568_v42, %v569_v43 }
 0x15d   : > { %571 = vst [vmem:[#allocation6] sm:$0x1] %v570_v44 }
 0x15e PF: > { %p863_p7 = scmp.ne.s32.totalorder %s1072_s15, 1 }
 0x15f   : > { %v576_v45 = vld [vmem:[#allocation2] sm:$0xff] (!%p863_p7)  ;;  %v577_v46 = vld [vmem:[#allocation2 + $0x8] sm:$0xff] (!%p863_p7)  ;;  %v578_v51 = vld [vmem:[#allocation2 + $0x10] sm:$0xff] (!%p863_p7) }
 0x160   : > { %574 = sbr.rel (%p863_p7) target bundleno = 381 (0x17d), region = 52  ;;  %v1186_v47 = vld [vmem:[#allocation5] ss:$0 sm:$0xff] (!%p863_p7)  ;;  %v579_v52 = vld [vmem:[#allocation2 + $0x18] sm:$0xff] (!%p863_p7)  ;;  %v581_v56 = vld [vmem:[#allocation2 + $0x28] sm:$0xff] (!%p863_p7) }
 0x161   : > { %v599_v48 = vmul.f32 (!%p863_p7), %v1186_v47, %v576_v45  ;;  %v600_v49 = vmul.f32 (!%p863_p7), %v1186_v47, %v577_v46  ;;  %v601_v53 = vmul.f32 (!%p863_p7), %v1186_v47, %v578_v51  ;;  %v602_v54 = vmul.f32 (!%p863_p7), %v1186_v47, %v579_v52  ;;  %v580_v55 = vld [vmem:[#allocation2 + $0x20] sm:$0xff] (!%p863_p7)  ;;  %v582_v57 = vld [vmem:[#allocation2 + $0x30] sm:$0xff] (!%p863_p7)  ;;  %v583_v62 = vld [vmem:[#allocation2 + $0x38] sm:$0xff] (!%p863_p7) }
 0x162   : > { %v603_v60 = vmul.f32 (!%p863_p7), %v1186_v47, %v580_v55  ;;  %v604_v61 = vmul.f32 (!%p863_p7), %v1186_v47, %v581_v56  ;;  %v605_v1 = vmul.f32 (!%p863_p7), %v1186_v47, %v582_v57  ;;  %v606_v2 = vmul.f32 (!%p863_p7), %v1186_v47, %v583_v62  ;;  %v584_v15 = vld [vmem:[#allocation2 + $0x40] sm:$0xff] (!%p863_p7)  ;;  %v585_v16 = vld [vmem:[#allocation2 + $0x48] sm:$0xff] (!%p863_p7)  ;;  %v586_v17 = vld [vmem:[#allocation2 + $0x50] sm:$0xff] (!%p863_p7) }
 0x163   : > { %v587_v23 = vld [vmem:[#allocation2 + $0x58] sm:$0xff] (!%p863_p7)  ;;  %v607_v25 = vmul.f32 (!%p863_p7), %v1186_v47, %v584_v15  ;;  %v608_v26 = vmul.f32 (!%p863_p7), %v1186_v47, %v585_v16  ;;  %v609_v27 = vmul.f32 (!%p863_p7), %v1186_v47, %v586_v17  ;;  %v588_v28 = vld [vmem:[#allocation2 + $0x60] sm:$0xff] (!%p863_p7)  ;;  %v589_v29 = vld [vmem:[#allocation2 + $0x68] sm:$0xff] (!%p863_p7) }
 0x164   : > { %v1190_v50 = vld [vmem:[#allocation6] ss:$0 sm:$0xff] (!%p863_p7)  ;;  %v610_v36 = vmul.f32 (!%p863_p7), %v1186_v47, %v587_v23  ;;  %v611_v39 = vmul.f32 (!%p863_p7), %v1186_v47, %v588_v28  ;;  %v612_v40 = vmul.f32 (!%p863_p7), %v1186_v47, %v589_v29  ;;  %v590_v41 = vld [vmem:[#allocation2 + $0x70] sm:$0xff] (!%p863_p7)  ;;  %v591_v52 = vld [vmem:[#allocation2 + $0x78] sm:$0xff] (!%p863_p7) }
 0x165   : > { %v622_v58 = vadd.f32 (!%p863_p7), %v1190_v50, %v599_v48  ;;  %v623_v59 = vadd.f32 (!%p863_p7), %v1190_v50, %v600_v49  ;;  %v624_v63 = vadd.f32 (!%p863_p7), %v1190_v50, %v601_v53  ;;  %v625_v0 = vadd.f32 (!%p863_p7), %v1190_v50, %v602_v54 }
 0x166   : > { %v626_v9 = vadd.f32 (!%p863_p7), %v1190_v50, %v603_v60  ;;  %v627_v10 = vadd.f32 (!%p863_p7), %v1190_v50, %v604_v61  ;;  %v628_v14 = vadd.f32 (!%p863_p7), %v1190_v50, %v605_v1  ;;  %v629_v21 = vadd.f32 (!%p863_p7), %v1190_v50, %v606_v2 }
 0x167   : > { %vm638_vm0 = vcmp.ge.f32.partialorder %v622_v58, 0.0  ;;  %vm639_vm1 = vcmp.ge.f32.partialorder %v623_v59, 0.0  ;;  %v654_v3 = vmul.f32 0.2, %v622_v58  ;;  %v655_v4 = vmul.f32 0.2, %v623_v59 }
 0x168   : > { %vm640_vm2 = vcmp.ge.f32.partialorder %v624_v63, 0.0  ;;  %vm641_vm3 = vcmp.ge.f32.partialorder %v625_v0, 0.0  ;;  %v656_v5 = vmul.f32 0.2, %v624_v63  ;;  %v657_v6 = vmul.f32 0.2, %v625_v0 }
 0x169   : > { %v670_v7 = vsel %vm638_vm0, %v622_v58, %v654_v3  ;;  %v671_v8 = vsel %vm639_vm1, %v623_v59, %v655_v4  ;;  %vm642_vm4 = vcmp.ge.f32.partialorder %v626_v9, 0.0  ;;  %vm643_vm5 = vcmp.ge.f32.partialorder %v627_v10, 0.0 }
 0x16a   : > { %v907_v11 = vpack.c.bf16 %v671_v8, %v670_v7  ;;  %v672_v12 = vsel %vm640_vm2, %v624_v63, %v656_v5  ;;  %v673_v13 = vsel %vm641_vm3, %v625_v0, %v657_v6  ;;  %v658_v19 = vmul.f32 0.2, %v626_v9 }
 0x16b   : > { %v912_v18 = vpack.c.bf16 %v673_v13, %v672_v12  ;;  %v659_v20 = vmul.f32 0.2, %v627_v10  ;;  %vm644_vm6 = vcmp.ge.f32.partialorder %v628_v14, 0.0  ;;  %v660_v22 = vmul.f32 0.2, %v628_v14 }
 0x16c   : > { %908 = vst [vmem:[%s1259_s4] sm:$0xff] %v907_v11   ;;  %v674_v24 = vsel %vm642_vm4, %v626_v9, %v658_v19  ;;  %vm645_vm7 = vcmp.ge.f32.partialorder %v629_v21, 0.0  ;;  %v661_v31 = vmul.f32 0.2, %v629_v21  ;;  %v630_v34 = vadd.f32 %v1190_v50, %v607_v25 }
 0x16d   : > { %944 = vst [vmem:[%s1259_s4 + $0x8] sm:$0xff] %v912_v18   ;;  %v675_v30 = vsel %vm643_vm5, %v627_v10, %v659_v20  ;;  %v676_v32 = vsel %vm644_vm6, %v628_v14, %v660_v22  ;;  %v631_v35 = vadd.f32 %v1190_v50, %v608_v26  ;;  %v632_v38 = vadd.f32 %v1190_v50, %v609_v27 }
 0x16e   : > { %v917_v33 = vpack.c.bf16 %v675_v30, %v674_v24  ;;  %v677_v37 = vsel %vm645_vm7, %v629_v21, %v661_v31  ;;  %vm646_vm8 = vcmp.ge.f32.partialorder %v630_v34, 0.0  ;;  %v662_v43 = vmul.f32 0.2, %v630_v34 }
 0x16f   : > { %v922_v42 = vpack.c.bf16 %v677_v37, %v676_v32  ;;  %vm647_vm9 = vcmp.ge.f32.partialorder %v631_v35, 0.0  ;;  %v663_v44 = vmul.f32 0.2, %v631_v35  ;;  %v633_v45 = vadd.f32 %v1190_v50, %v610_v36 }
 0x170   : > { %945 = vst [vmem:[%s1259_s4 + $0x10] sm:$0xff] %v917_v33   ;;  %vm648_vm10 = vcmp.ge.f32.partialorder %v632_v38, 0.0  ;;  %v664_v46 = vmul.f32 0.2, %v632_v38  ;;  %v678_v48 = vsel %vm646_vm8, %v630_v34, %v662_v43  ;;  %v634_v49 = vadd.f32 %v1190_v50, %v611_v39 }
 0x171   : > { %946 = vst [vmem:[%s1259_s4 + $0x18] sm:$0xff] %v922_v42   ;;  %v635_v51 = vadd.f32 %v1190_v50, %v612_v40  ;;  %v613_v53 = vmul.f32 %v1186_v47, %v590_v41  ;;  %v679_v54 = vsel %vm647_vm9, %v631_v35, %v663_v44  ;;  %vm649_vm11 = vcmp.ge.f32.partialorder %v633_v45, 0.0 }
 0x172   : > { %v665_v55 = vmul.f32 0.2, %v633_v45  ;;  %v680_v56 = vsel %vm648_vm10, %v632_v38, %v664_v46  ;;  %v927_v57 = vpack.c.bf16 %v679_v54, %v678_v48  ;;  %vm650_vm12 = vcmp.ge.f32.partialorder %v634_v49, 0.0 }
 0x173   : > { %vm651_vm13 = vcmp.ge.f32.partialorder %v635_v51, 0.0  ;;  %v666_v58 = vmul.f32 0.2, %v634_v49  ;;  %v667_v60 = vmul.f32 0.2, %v635_v51  ;;  %v614_v61 = vmul.f32 %v1186_v47, %v591_v52 }
 0x174   : > { %v681_v59 = vsel %vm649_vm11, %v633_v45, %v665_v55  ;;  %v636_v62 = vadd.f32 %v1190_v50, %v613_v53  ;;  %947 = vst [vmem:[%s1259_s4 + $0x20] sm:$0xff] %v927_v57  }
 0x175   : > { %v932_v63 = vpack.c.bf16 %v681_v59, %v680_v56  ;;  %v682_v0 = vsel %vm650_vm12, %v634_v49, %v666_v58  ;;  %v683_v1 = vsel %vm651_vm13, %v635_v51, %v667_v60  ;;  %v637_v2 = vadd.f32 %v1190_v50, %v614_v61 }
 0x176   : > { %vm652_vm14 = vcmp.ge.f32.partialorder %v636_v62, 0.0  ;;  %v668_v3 = vmul.f32 0.2, %v636_v62  ;;  %v937_v4 = vpack.c.bf16 %v683_v1, %v682_v0 }
 0x177   : > { %948 = vst [vmem:[%s1259_s4 + $0x28] sm:$0xff] %v932_v63   ;;  %vm653_vm15 = vcmp.ge.f32.partialorder %v637_v2, 0.0  ;;  %v669_v47 = vmul.f32 0.2, %v637_v2 }
 0x178   : > { %v684_v5 = vsel %vm652_vm14, %v636_v62, %v668_v3  ;;  %949 = vst [vmem:[%s1259_s4 + $0x30] sm:$0xff] %v937_v4  }
 0x179   : > { %v685_v6 = vsel %vm653_vm15, %v637_v2, %v669_v47 }
 0x17a   : > { %v942_v7 = vpack.c.bf16 %v685_v6, %v684_v5 }
 0x17c   : > { %950 = vst [vmem:[%s1259_s4 + $0x38] sm:$0xff] %v942_v7  }
 0x17d PF: > { %s14_s17 = sadd.s32 1, %s1080_s17   ;;  %s1260_s15 = smov %s1076_s16 }
 0x17e   : > { %p11_p8 = scmp.ge.s32.totalorder %s14_s17, 4   ;;  %s1261_s16 = smov %s1263_s18 }
 0x180   :  { %13 = sbr.rel (!%p11_p8) target bundleno = 2 (0x2), region = 84 }

// kernel: discriminator_forward.10
= control target key start
LH: loop header
LB: loop body
LE: loop exit
PB: predicated region body
PF: predicated region fallthrough
CT: control target
= control target key end

     0   :  { %s837_s15 = smov 0   ;;  %s839_s16 = smov 0   ;;  %s942_s0 = inlined_call_operand.vmem [shape: bf16[32,256], index: 0, kind: input, shape index: {}]   ;;  %s943_s1 = inlined_call_operand.vmem [shape: bf16[256,128], index: 1, kind: input, shape index: {}]   ;;  %s944_s2 = inlined_call_operand.vmem [shape: f32[1,128], index: 2, kind: input, shape index: {}]   ;;  %s945_s3 = inlined_call_operand.vmem [shape: f32[1,128], index: 3, kind: input, shape index: {}]   ;;  %s946_s4 = inlined_call_operand.vmem [shape: bf16[32,128], index: 4, kind: output, shape index: {}]  }
   0x1   :  { %s841_s17 = smov 0  }
   0x2 LB: > { %s26_s18 = sadd.s32 1, %s805_s16  ;;  %p642_p0 = scmp.ge.s32.totalorder %s809_s17, 1  ;;  %s809_s17 = sphi %s841_s17, %s14_s17   ;;  %s805_s16 = sphi %s839_s16, %s948_s16   ;;  %s801_s15 = sphi %s837_s15, %s947_s15  }
   0x3   : > { %p28_p1 = scmp.ge.s32.totalorder %s26_s18, 2  ;;  %p186_p2 = scmp.lt.s32.totalorder %s809_s17, 3 }
   0x5   : > { %s950_s18 = smov (%p28_p1, %s26_s18), 0  ;;  %p187_p3 = pnand %p642_p0, %p186_p2 }
   0x6   : > { %p237_p4 = scmp.eq.s32.totalorder (!%p187_p3), %s801_s15, 0 }
   0x7   : > { %190 = sbr.rel (%p187_p3) target bundleno = 344 (0x158), region = 36 }
   0xe   : > { %242 = sbr.rel (!%p237_p4) target bundleno = 21 (0x15), region = 40  ;;  %v811_v0 = vmov (%p237_p4), 0.0  }
   0xf   : > { %243 = vst [vmem:[#allocation3] sm:$0x1] (%p237_p4), %v811_v0  ;;  %244 = vst [vmem:[#allocation4] sm:$0x1] (%p237_p4), %v811_v0 }
  0x15 PF: > { %p644_p5 = scmp.ne.s32.totalorder %s801_s15, 0 }
  0x16   : > { %v763_v1 = vld [vmem:[%s943_s1 + $0x40] sm:$0xff] (!%p644_p5)   ;;  %v765_v3 = vld [vmem:[%s943_s1 + $0x48] sm:$0xff] (!%p644_p5)   ;;  %v767_v5 = vld [vmem:[%s943_s1 + $0x50] sm:$0xff] (!%p644_p5)  }
  0x17   : > { %247 = sbr.rel (%p644_p5) target bundleno = 295 (0x127), region = 44  ;;  %v764_v2 = vld [vmem:[%s943_s1] sm:$0xff] (!%p644_p5)   ;;  %694 = vmatprep.subr.bf16.mxu0 (!%p644_p5), %v763_v1  ;;  %722 = vmatprep.subr.bf16.mxu1 (!%p644_p5), %v763_v1  ;;  %v766_v4 = vld [vmem:[%s943_s1 + $0x8] sm:$0xff] (!%p644_p5)   ;;  %v768_v6 = vld [vmem:[%s943_s1 + $0x10] sm:$0xff] (!%p644_p5)  }
  0x18   : > { %695 = vmatpush3.bf16.msra.mxu0 (!%p644_p5), %v764_v2  ;;  %730 = vmatpush3.bf16.msra.mxu1 (!%p644_p5), %v764_v2  ;;  %v769_v7 = vld [vmem:[%s943_s1 + $0x58] sm:$0xff] (!%p644_p5)   ;;  %v771_v9 = vld [vmem:[%s943_s1 + $0x60] sm:$0xff] (!%p644_p5)   ;;  %v773_v11 = vld [vmem:[%s943_s1 + $0x68] sm:$0xff] (!%p644_p5)  }
  0x19   : > { %696 = vmatprep.subr.bf16.mxu0 (!%p644_p5), %v765_v3  ;;  %723 = vmatprep.subr.bf16.mxu1 (!%p644_p5), %v765_v3  ;;  %v770_v8 = vld [vmem:[%s943_s1 + $0x18] sm:$0xff] (!%p644_p5)   ;;  %v772_v10 = vld [vmem:[%s943_s1 + $0x20] sm:$0xff] (!%p644_p5)   ;;  %v774_v14 = vld [vmem:[%s943_s1 + $0x28] sm:$0xff] (!%p644_p5)  }
  0x1a   : > { %v781_v12 = vld [vmem:[%s942_s0 + $0x4] ss:$8 sps:$4 sm:$0xff] (!%p644_p5)   ;;  %v784_v13 = vld [vmem:[%s942_s0 + $0x14] ss:$8 sps:$4 sm:$0xff] (!%p644_p5)   ;;  %v779_v19 = vld [vmem:[%s942_s0] ss:$8 sps:$4 sm:$0xff] (!%p644_p5)  }
  0x1b   : > { %v775_v15 = vld [vmem:[%s943_s1 + $0x70] sm:$0xff] (!%p644_p5)   ;;  %432 = vmatprep.mubr.bf16.mxu0 (!%p644_p5), %v781_v12  ;;  %440 = vmatprep.mubr.bf16.mxu1 (!%p644_p5), %v784_v13  ;;  %v777_v17 = vld [vmem:[%s943_s1 + $0x78] sm:$0xff] (!%p644_p5)   ;;  %v454_v52 = vld [vmem:[#allocation3] sm:$0x1] (!%p644_p5) }
  0x1c   : > { %697 = vmatpush3.bf16.msra.mxu0 (!%p644_p5), %v766_v4  ;;  %731 = vmatpush3.bf16.msra.mxu1 (!%p644_p5), %v766_v4  ;;  %v776_v16 = vld [vmem:[%s943_s1 + $0x30] sm:$0xff] (!%p644_p5)   ;;  %v778_v18 = vld [vmem:[%s943_s1 + $0x38] sm:$0xff] (!%p644_p5)   ;;  %v466_v55 = vld [vmem:[#allocation4] sm:$0x1] (!%p644_p5) }
  0x1d   : > { %698 = vmatprep.subr.bf16.mxu0 (!%p644_p5), %v767_v5  ;;  %724 = vmatprep.subr.bf16.mxu1 (!%p644_p5), %v767_v5  ;;  %v782_v20 = vld [vmem:[%s942_s0 + $0x10] ss:$8 sps:$4 sm:$0xff] (!%p644_p5)  }
  0x20   : > { %699 = vmatpush3.bf16.msra.mxu0 %v768_v6  ;;  %732 = vmatpush3.bf16.msra.mxu1 %v768_v6 }
  0x21   : > { %700 = vmatprep.subr.bf16.mxu0 %v769_v7  ;;  %725 = vmatprep.subr.bf16.mxu1 %v769_v7 }
  0x24   : > { %701 = vmatpush3.bf16.msra.mxu0 %v770_v8  ;;  %733 = vmatpush3.bf16.msra.mxu1 %v770_v8 }
  0x25   : > { %702 = vmatprep.subr.bf16.mxu0 %v771_v9  ;;  %726 = vmatprep.subr.bf16.mxu1 %v771_v9 }
  0x28   : > { %703 = vmatpush3.bf16.msra.mxu0 %v772_v10  ;;  %734 = vmatpush3.bf16.msra.mxu1 %v772_v10 }
  0x29   : > { %704 = vmatprep.subr.bf16.mxu0 %v773_v11  ;;  %727 = vmatprep.subr.bf16.mxu1 %v773_v11 }
  0x2c   : > { %705 = vmatpush3.bf16.msra.mxu0 %v774_v14  ;;  %735 = vmatpush3.bf16.msra.mxu1 %v774_v14 }
  0x2d   : > { %706 = vmatprep.subr.bf16.mxu0 %v775_v15  ;;  %728 = vmatprep.subr.bf16.mxu1 %v775_v15 }
  0x30   : > { %707 = vmatpush3.bf16.msra.mxu0 %v776_v16  ;;  %736 = vmatpush3.bf16.msra.mxu1 %v776_v16 }
  0x31   : > { %708 = vmatprep.subr.bf16.mxu0 %v777_v17  ;;  %729 = vmatprep.subr.bf16.mxu1 %v777_v17 }
  0x34   : > { %709 = vmatpush3.bf16.msra.mxu0 %v778_v18  ;;  %737 = vmatpush3.bf16.msra.mxu1 %v778_v18 }
  0x37   : > { %433 = vmatmul.mubr.bf16.vlgmr.msra.gmra.mrb[0].mxu0 %v779_v19  ;;  %441 = vmatmul.mubr.bf16.vlgmr.msra.gmra.mrb[0].mxu1 %v782_v20 }
 0x10a   : > { %v710_v21 = vpop.f32.mrb[0].mxu0  ;;  %v716_v22 = vpop.f32.mrb[0].mxu1 }
 0x10b   : > { %v711_v23 = vpop.f32.mrb[1].mxu0  ;;  %v717_v24 = vpop.f32.mrb[1].mxu1 }
 0x10c   : > { %v712_v25 = vadd.f32 %v711_v23, %v710_v21  ;;  %v713_v26 = vpop.f32.mrb[2].mxu0  ;;  %v718_v27 = vadd.f32 %v717_v24, %v716_v22  ;;  %v719_v28 = vpop.f32.mrb[2].mxu1 }
 0x10d   : > { %v714_v29 = vpop.f32.mrb[3].mxu0  ;;  %v720_v30 = vpop.f32.mrb[3].mxu1 }
 0x10e   : > { %450 = vst [vmem:[#allocation2] sm:$0xff] %v712_v25  ;;  %452 = vst [vmem:[#allocation2 + $0x10] sm:$0xff] %v718_v27  ;;  %v715_v31 = vadd.f32 %v714_v29, %v713_v26  ;;  %v721_v32 = vadd.f32 %v720_v30, %v719_v28  ;;  %v467_v33 = vmul.f32 %v712_v25, %v712_v25 }
 0x10f   : > { %v469_v34 = vmul.f32 %v718_v27, %v718_v27 }
 0x110   : > { %451 = vst [vmem:[#allocation2 + $0x8] sm:$0xff] %v715_v31  ;;  %v455_v35 = vadd.f32 %v715_v31, %v712_v25  ;;  %v468_v36 = vmul.f32 %v715_v31, %v715_v31  ;;  %453 = vst [vmem:[#allocation2 + $0x18] sm:$0xff] %v721_v32  ;;  %v470_v40 = vmul.f32 %v721_v32, %v721_v32 }
 0x112   : > { %v471_v37 = vadd.f32 %v468_v36, %v467_v33  ;;  %v456_v38 = vadd.f32 %v718_v27, %v455_v35 }
 0x114   : > { %v457_v39 = vadd.f32 %v721_v32, %v456_v38  ;;  %v472_v41 = vadd.f32 %v471_v37, %v469_v34 }
 0x116   : > { %v458_v42 = vrot.slane %v457_v39, 4  ;;  %v473_v43 = vadd.f32 %v472_v41, %v470_v40 }
 0x118   : > { %v459_v44 = vadd.f32 %v458_v42, %v457_v39  ;;  %v474_v45 = vrot.slane %v473_v43, 4 }
 0x11a   : > { %v460_v46 = vrot.slane %v459_v44, 2  ;;  %v475_v47 = vadd.f32 %v474_v45, %v473_v43 }
 0x11c   : > { %v461_v48 = vadd.f32 %v460_v46, %v459_v44  ;;  %v476_v49 = vrot.slane %v475_v47, 2 }
 0x11e   : > { %v462_v50 = vrot.slane %v461_v48, 1  ;;  %v477_v51 = vadd.f32 %v476_v49, %v475_v47 }
 0x120   : > { %v463_v53 = vadd.f32 %v462_v50, %v461_v48  ;;  %v478_v54 = vrot.slane %v477_v51, 1 }
 0x122   : > { %v464_v56 = vadd.f32 %v463_v53, %v454_v52  ;;  %v479_v57 = vadd.f32 %v478_v54, %v477_v51 }
 0x124   : > { %465 = vst [vmem:[#allocation3] sm:$0x1] %v464_v56  ;;  %v480_v58 = vadd.f32 %v479_v57, %v466_v55 }
 0x126   : > { %481 = vst [vmem:[#allocation4] sm:$0x1] %v480_v58 }
 0x127 PF: > { %p482_p6 = scmp.eq.s32.totalorder %s801_s15, 1 }
 0x128   : > { %v494_v3 = vld [vmem:[%s944_s2] sm:$0x1] (%p482_p6) }
 0x129   : > { %486 = sbr.rel (!%p482_p6) target bundleno = 328 (0x148), region = 48  ;;  %v499_v6 = vld [vmem:[%s945_s3] sm:$0x1] (%p482_p6) }
 0x12b   : > { %v487_v59 = vld [vmem:[#allocation3] sm:$0x1] (%p482_p6) }
 0x12c   : > { %v488_v61 = vmul.f32 (%p482_p6), 0.03125, %v487_v59 }
 0x12d   : > { %v489_v60 = vld [vmem:[#allocation4] sm:$0x1] (%p482_p6) }
 0x12e   : > { %v490_v62 = vmul.f32 (%p482_p6), 0.03125, %v489_v60  ;;  %v491_v63 = vmul.f32 (%p482_p6), %v488_v61, %v488_v61 }
 0x130   : > { %v492_v0 = vsub.f32 %v490_v62, %v491_v63 }
 0x132   : > { %v493_v1 = vmax.f32 %v492_v0, 0.0 }
 0x134   : > { %v495_v2 = vadd.f32 1e-05, %v493_v1 }
 0x136   : > { %785 = vrsqrt.f32 %v495_v2 }
 0x140   : > { %v786_v4 = vpop.eup %785 }
 0x141   : > { %v497_v5 = vmul.f32 %v786_v4, %v494_v3 }
 0x143   : > { %498 = vst [vmem:[#allocation5] sm:$0x1] %v497_v5  ;;  %v500_v7 = vmul.f32 %v497_v5, %v488_v61 }
 0x145   : > { %v501_v8 = vsub.f32 %v499_v6, %v500_v7 }
 0x147   : > { %502 = vst [vmem:[#allocation6] sm:$0x1] %v501_v8 }
 0x148 PF: > { %p666_p7 = scmp.ne.s32.totalorder %s801_s15, 1 }
 0x149   : > { %v507_v9 = vld [vmem:[#allocation2] sm:$0xff] (!%p666_p7)  ;;  %v508_v10 = vld [vmem:[#allocation2 + $0x8] sm:$0xff] (!%p666_p7)  ;;  %v509_v15 = vld [vmem:[#allocation2 + $0x10] sm:$0xff] (!%p666_p7) }
 0x14a   : > { %505 = sbr.rel (%p666_p7) target bundleno = 344 (0x158), region = 52  ;;  %v667_v11 = vld [vmem:[#allocation5] ss:$0 sm:$0xff] (!%p666_p7)  ;;  %v510_v16 = vld [vmem:[#allocation2 + $0x18] sm:$0xff] (!%p666_p7) }
 0x14b   : > { %v518_v12 = vmul.f32 (!%p666_p7), %v667_v11, %v507_v9  ;;  %v519_v13 = vmul.f32 (!%p666_p7), %v667_v11, %v508_v10  ;;  %v520_v17 = vmul.f32 (!%p666_p7), %v667_v11, %v509_v15  ;;  %v521_v18 = vmul.f32 (!%p666_p7), %v667_v11, %v510_v16 }
 0x14e   : > { %v668_v14 = vld [vmem:[#allocation6] ss:$0 sm:$0xff] (!%p666_p7) }
 0x14f   : > { %v529_v19 = vadd.f32 (!%p666_p7), %v668_v14, %v518_v12  ;;  %v530_v20 = vadd.f32 (!%p666_p7), %v668_v14, %v519_v13  ;;  %v531_v21 = vadd.f32 (!%p666_p7), %v668_v14, %v520_v17  ;;  %v532_v22 = vadd.f32 (!%p666_p7), %v668_v14, %v521_v18 }
 0x151   : > { %vm533_vm0 = vcmp.ge.f32.partialorder %v529_v19, 0.0  ;;  %vm534_vm1 = vcmp.ge.f32.partialorder %v530_v20, 0.0  ;;  %v537_v23 = vmul.f32 0.2, %v529_v19  ;;  %v538_v24 = vmul.f32 0.2, %v530_v20 }
 0x152   : > { %vm535_vm2 = vcmp.ge.f32.partialorder %v531_v21, 0.0  ;;  %vm536_vm3 = vcmp.ge.f32.partialorder %v532_v22, 0.0  ;;  %v539_v25 = vmul.f32 0.2, %v531_v21  ;;  %v540_v26 = vmul.f32 0.2, %v532_v22 }
 0x153   : > { %v541_v27 = vsel %vm533_vm0, %v529_v19, %v537_v23  ;;  %v542_v28 = vsel %vm534_vm1, %v530_v20, %v538_v24 }
 0x154   : > { %v686_v29 = vpack.c.bf16 %v542_v28, %v541_v27  ;;  %v543_v30 = vsel %vm535_vm2, %v531_v21, %v539_v25  ;;  %v544_v31 = vsel %vm536_vm3, %v532_v22, %v540_v26 }
 0x155   : > { %v691_v32 = vpack.c.bf16 %v544_v31, %v543_v30 }
 0x156   : > { %687 = vst [vmem:[%s946_s4] sm:$0xff] %v686_v29  }
 0x157   : > { %693 = vst [vmem:[%s946_s4 + $0x8] sm:$0xff] %v691_v32  }
 0x158 PF: > { %s14_s17 = sadd.s32 1, %s809_s17   ;;  %s947_s15 = smov %s805_s16 }
 0x159   : > { %p11_p8 = scmp.ge.s32.totalorder %s14_s17, 4   ;;  %s948_s16 = smov %s950_s18 }
 0x15b   :  { %13 = sbr.rel (!%p11_p8) target bundleno = 2 (0x2), region = 84 }

// kernel: discriminator_forward.13
= control target key start
LH: loop header
LB: loop body
LE: loop exit
PB: predicated region body
PF: predicated region fallthrough
CT: control target
= control target key end

     0   :  { %v357_v0 = vmov 0.0   ;;  %vm358_vm0 = vmmov 0   ;;  %s449_s1 = inlined_call_operand.vmem [shape: bf16[128,128], index: 1, kind: input, shape index: {}]   ;;  %s450_s3 = inlined_call_operand.vmem [shape: bf16[128,128], index: 3, kind: input, shape index: {}]   ;;  %s451_s0 = inlined_call_operand.vmem [shape: bf16[8,128], index: 0, kind: input, shape index: {}]   ;;  %s452_s2 = inlined_call_operand.vmem [shape: f32[1,128], index: 2, kind: input, shape index: {}]   ;;  %s453_s4 = inlined_call_operand.vmem [shape: f32[1,128], index: 4, kind: input, shape index: {}]   ;;  %s454_s5 = inlined_call_operand.vmem [shape: f32[8,128], index: 5, kind: output, shape index: {}]  }
   0x1   :  { %295 = vmatprep.subr.bf16.mxu0 %v357_v0  ;;  %v337_v1 = vld [vmem:[%s449_s1] sm:$0xff]   ;;  %311 = vmatprep.mubr.msk.bf16.mxu0 %vm358_vm0, %v357_v0  ;;  %v338_v2 = vld [vmem:[%s449_s1 + $0x8] sm:$0xff]   ;;  %v339_v3 = vld [vmem:[%s449_s1 + $0x10] sm:$0xff]  }
   0x2   :  { %315 = vmatprep.subr.bf16.mxu1 %v357_v0  ;;  %331 = vmatprep.mubr.msk.bf16.mxu1 %vm358_vm0, %v357_v0  ;;  %v345_v4 = vld [vmem:[%s450_s3] sm:$0xff]   ;;  %v340_v5 = vld [vmem:[%s449_s1 + $0x18] sm:$0xff]   ;;  %v346_v6 = vld [vmem:[%s450_s3 + $0x8] sm:$0xff]  }
   0x3   :  { %296 = vmatpush3.bf16.msra.mxu0 %v337_v1  ;;  %316 = vmatpush3.bf16.msra.mxu1 %v345_v4  ;;  %v341_v7 = vld [vmem:[%s449_s1 + $0x20] sm:$0xff]   ;;  %v347_v8 = vld [vmem:[%s450_s3 + $0x10] sm:$0xff]   ;;  %v342_v9 = vld [vmem:[%s449_s1 + $0x28] sm:$0xff]  }
   0x4   :  { %297 = vmatprep.subr.bf16.mxu0 %v357_v0  ;;  %317 = vmatprep.subr.bf16.mxu1 %v357_v0  ;;  %v348_v10 = vld [vmem:[%s450_s3 + $0x18] sm:$0xff]   ;;  %v343_v11 = vld [vmem:[%s449_s1 + $0x30] sm:$0xff]   ;;  %v349_v12 = vld [vmem:[%s450_s3 + $0x20] sm:$0xff]  }
   0x5   :  { %v344_v13 = vld [vmem:[%s449_s1 + $0x38] sm:$0xff]   ;;  %v350_v14 = vld [vmem:[%s450_s3 + $0x28] sm:$0xff]   ;;  %v21_v15 = vld [vmem:[%s451_s0] sm:$0xf] }
   0x6   :  { %v351_v16 = vld [vmem:[%s450_s3 + $0x30] sm:$0xff]   ;;  %v352_v17 = vld [vmem:[%s450_s3 + $0x38] sm:$0xff]   ;;  %v259_v18 = vld [vmem:[%s452_s2] ss:$0 sm:$0xff] }
   0x7   :  { %298 = vmatpush3.bf16.msra.mxu0 %v338_v2  ;;  %318 = vmatpush3.bf16.msra.mxu1 %v346_v6  ;;  %v268_v27 = vld [vmem:[%s453_s4] ss:$0 sm:$0xff] }
   0x8   :  { %299 = vmatprep.subr.bf16.mxu0 %v357_v0  ;;  %319 = vmatprep.subr.bf16.mxu1 %v357_v0 }
   0xb   :  { %300 = vmatpush3.bf16.msra.mxu0 %v339_v3  ;;  %320 = vmatpush3.bf16.msra.mxu1 %v347_v8 }
   0xc   :  { %301 = vmatprep.subr.bf16.mxu0 %v357_v0  ;;  %321 = vmatprep.subr.bf16.mxu1 %v357_v0 }
   0xf   :  { %302 = vmatpush3.bf16.msra.mxu0 %v340_v5  ;;  %322 = vmatpush3.bf16.msra.mxu1 %v348_v10 }
  0x10   :  { %303 = vmatprep.subr.bf16.mxu0 %v357_v0  ;;  %323 = vmatprep.subr.bf16.mxu1 %v357_v0 }
  0x13   :  { %304 = vmatpush3.bf16.msra.mxu0 %v341_v7  ;;  %324 = vmatpush3.bf16.msra.mxu1 %v349_v12 }
  0x14   :  { %305 = vmatprep.subr.bf16.mxu0 %v357_v0  ;;  %325 = vmatprep.subr.bf16.mxu1 %v357_v0 }
  0x17   :  { %306 = vmatpush3.bf16.msra.mxu0 %v342_v9  ;;  %326 = vmatpush3.bf16.msra.mxu1 %v350_v14 }
  0x18   :  { %307 = vmatprep.subr.bf16.mxu0 %v357_v0  ;;  %327 = vmatprep.subr.bf16.mxu1 %v357_v0 }
  0x1b   :  { %308 = vmatpush3.bf16.msra.mxu0 %v343_v11  ;;  %328 = vmatpush3.bf16.msra.mxu1 %v351_v16 }
  0x1c   :  { %309 = vmatprep.subr.bf16.mxu0 %v357_v0  ;;  %329 = vmatprep.subr.bf16.mxu1 %v357_v0 }
  0x1f   :  { %310 = vmatpush3.bf16.msra.mxu0 %v344_v13  ;;  %330 = vmatpush3.bf16.msra.mxu1 %v352_v17 }
  0x22   :  { %312 = vmatmul.mubr.bf16.vlgmr.msra.gmra.mrb[0].mxu0 %v21_v15 }
  0xf5   :  { %v127_v19 = vpop.f32.mrb[0].mxu0 }
  0xf6   :  { %v128_v20 = vadd.f32 %v259_v18, %v127_v19  ;;  %v313_v21 = vpop.f32.mrb[1].mxu0 }
  0xf7   :  { %v130_v22 = vpop.f32.mrb[2].mxu0 }
  0xf8   :  { %vm133_vm1 = vcmp.ge.f32.partialorder %v128_v20, 0.0  ;;  %v134_v23 = vmul.f32 0.2, %v128_v20  ;;  %v314_v24 = vpop.f32.mrb[3].mxu0 }
  0xfa   :  { %v135_v25 = vsel %vm133_vm1, %v128_v20, %v134_v23 }
  0xfb   :  { %v136_v26 = vpack.c.bf16 %v135_v25, %v135_v25 }
  0xfd   :  { %332 = vmatmul.mubr.bf16.vlgmr.msra.gmra.mrb[0].mxu1 %v136_v26 }
 0x1d0   :  { %v242_v28 = vpop.f32.mrb[0].mxu1 }
 0x1d1   :  { %v243_v29 = vadd.f32 %v268_v27, %v242_v28  ;;  %v333_v30 = vpop.f32.mrb[1].mxu1 }
 0x1d2   :  { %v245_v31 = vpop.f32.mrb[2].mxu1 }
 0x1d3   :  { %v248_v32 = vsub.f32 0.0, %v243_v29  ;;  %v334_v33 = vpop.f32.mrb[3].mxu1 }
 0x1d5   :  { %v249_v34 = vmul.f32 1.442695, %v248_v32 }
 0x1d7   :  { %353 = vpow2.f32 %v249_v34 }
 0x1e1   :  { %v354_v35 = vpop.eup %353 }
 0x1e2   :  { %v251_v36 = vadd.f32 1.0, %v354_v35 }
 0x1e4   :  { %355 = vrcp.f32 %v251_v36 }
 0x1ee   :  { %v356_v37 = vpop.eup %355 }
 0x1ef   :  { %254 = vst [vmem:[%s454_s5] sm:$0xff] %v356_v37 }

// kernel: discriminator_forward.12
= control target key start
LH: loop header
LB: loop body
LE: loop exit
PB: predicated region body
PF: predicated region fallthrough
CT: control target
= control target key end

     0   :  { %s866_s15 = smov 0   ;;  %s868_s16 = smov 0   ;;  %s986_s0 = inlined_call_operand.vmem [shape: bf16[8,384], index: 0, kind: input, shape index: {}]   ;;  %s987_s1 = inlined_call_operand.vmem [shape: bf16[384,128], index: 1, kind: input, shape index: {}]   ;;  %s988_s2 = inlined_call_operand.vmem [shape: f32[1,128], index: 2, kind: input, shape index: {}]   ;;  %s989_s3 = inlined_call_operand.vmem [shape: f32[1,128], index: 3, kind: input, shape index: {}]   ;;  %s990_s4 = inlined_call_operand.vmem [shape: bf16[8,128], index: 4, kind: output, shape index: {}]  }
   0x1   :  { %s870_s17 = smov 0  }
   0x2 LB: > { %s26_s18 = sadd.s32 1, %s832_s16  ;;  %p667_p0 = scmp.ge.s32.totalorder %s836_s17, 1  ;;  %s836_s17 = sphi %s870_s17, %s14_s17   ;;  %s832_s16 = sphi %s868_s16, %s992_s16   ;;  %s828_s15 = sphi %s866_s15, %s991_s15  }
   0x3   : > { %p28_p1 = scmp.ge.s32.totalorder %s26_s18, 2  ;;  %p184_p2 = scmp.lt.s32.totalorder %s836_s17, 3 }
   0x5   : > { %s994_s18 = smov (%p28_p1, %s26_s18), 0  ;;  %p185_p3 = pnand %p667_p0, %p184_p2 }
   0x6   : > { %p229_p4 = scmp.eq.s32.totalorder (!%p185_p3), %s828_s15, 0 }
   0x7   : > { %188 = sbr.rel (%p185_p3) target bundleno = 337 (0x151), region = 36 }
   0xe   : > { %234 = sbr.rel (!%p229_p4) target bundleno = 21 (0x15), region = 40  ;;  %v838_v0 = vmov (%p229_p4), 0.0  }
   0xf   : > { %235 = vst [vmem:[#allocation3] sm:$0x1] (%p229_p4), %v838_v0  ;;  %236 = vst [vmem:[#allocation4] sm:$0x1] (%p229_p4), %v838_v0 }
  0x15 PF: > { %p669_p5 = scmp.ne.s32.totalorder %s828_s15, 0 }
  0x16   : > { %v785_v1 = vld [vmem:[%s987_s1 + $0x40] sm:$0xff] (!%p669_p5)   ;;  %v839_v2 = vmov (!%p669_p5), 0.0   ;;  %vm840_vm0 = vmmov (!%p669_p5), 0   ;;  %v788_v5 = vld [vmem:[%s987_s1 + $0x48] sm:$0xff] (!%p669_p5)   ;;  %v791_v8 = vld [vmem:[%s987_s1 + $0x50] sm:$0xff] (!%p669_p5)  }
  0x17   : > { %239 = sbr.rel (%p669_p5) target bundleno = 289 (0x121), region = 44  ;;  %738 = vmatprep.subr.bf16.mxu1 (!%p669_p5), %v839_v2  ;;  %v786_v3 = vld [vmem:[%s987_s1] sm:$0xff] (!%p669_p5)   ;;  %707 = vmatprep.subr.bf16.mxu0 (!%p669_p5), %v785_v1  ;;  %v789_v6 = vld [vmem:[%s987_s1 + $0x8] sm:$0xff] (!%p669_p5)   ;;  %v792_v9 = vld [vmem:[%s987_s1 + $0x10] sm:$0xff] (!%p669_p5)  }
  0x18   : > { %v787_v4 = vld [vmem:[%s987_s1 + $0x80] sm:$0xff] (!%p669_p5)   ;;  %754 = vmatprep.mubr.msk.bf16.mxu1 (!%p669_p5), %vm840_vm0, %v839_v2  ;;  %708 = vmatpush3.bf16.msra.mxu0 (!%p669_p5), %v786_v3  ;;  %v790_v7 = vld [vmem:[%s987_s1 + $0x88] sm:$0xff] (!%p669_p5)   ;;  %v793_v10 = vld [vmem:[%s987_s1 + $0x90] sm:$0xff] (!%p669_p5)  }
  0x19   : > { %739 = vmatpush3.bf16.msra.mxu1 (!%p669_p5), %v787_v4  ;;  %709 = vmatprep.subr.bf16.mxu0 (!%p669_p5), %v788_v5  ;;  %v794_v11 = vld [vmem:[%s987_s1 + $0x58] sm:$0xff] (!%p669_p5)   ;;  %v797_v14 = vld [vmem:[%s987_s1 + $0x60] sm:$0xff] (!%p669_p5)   ;;  %v800_v17 = vld [vmem:[%s987_s1 + $0x68] sm:$0xff] (!%p669_p5)  }
  0x1a   : > { %740 = vmatprep.subr.bf16.mxu1 (!%p669_p5), %v839_v2  ;;  %v795_v12 = vld [vmem:[%s987_s1 + $0x18] sm:$0xff] (!%p669_p5)   ;;  %v798_v15 = vld [vmem:[%s987_s1 + $0x20] sm:$0xff] (!%p669_p5)   ;;  %v801_v18 = vld [vmem:[%s987_s1 + $0x28] sm:$0xff] (!%p669_p5)  }
  0x1b   : > { %v796_v13 = vld [vmem:[%s987_s1 + $0x98] sm:$0xff] (!%p669_p5)   ;;  %v799_v16 = vld [vmem:[%s987_s1 + $0xa0] sm:$0xff] (!%p669_p5)   ;;  %v802_v19 = vld [vmem:[%s987_s1 + $0xa8] sm:$0xff] (!%p669_p5)  }
  0x1c   : > { %710 = vmatpush3.bf16.msra.mxu0 (!%p669_p5), %v789_v6  ;;  %v803_v20 = vld [vmem:[%s987_s1 + $0x70] sm:$0xff] (!%p669_p5)   ;;  %v806_v23 = vld [vmem:[%s987_s1 + $0x78] sm:$0xff] (!%p669_p5)   ;;  %v240_v24 = vld [vmem:[%s986_s0] sm:$0xff] (!%p669_p5) }
  0x1d   : > { %741 = vmatpush3.bf16.msra.mxu1 (!%p669_p5), %v790_v7  ;;  %711 = vmatprep.subr.bf16.mxu0 (!%p669_p5), %v791_v8  ;;  %v804_v21 = vld [vmem:[%s987_s1 + $0x30] sm:$0xff] (!%p669_p5)   ;;  %v671_v25 = vcombine.high (!%p669_p5), %v240_v24, %v240_v24  ;;  %v807_v26 = vld [vmem:[%s987_s1 + $0x38] sm:$0xff] (!%p669_p5)   ;;  %v670_v28 = vcombine.low (!%p669_p5), %v240_v24, %v240_v24  ;;  %v811_v29 = vld [vmem:[%s986_s0 + $0x8] ss:$0 sps:$4 sm:$0xff] (!%p669_p5)  }
  0x1e   : > { %742 = vmatprep.subr.bf16.mxu1 %v839_v2  ;;  %v805_v22 = vld [vmem:[%s987_s1 + $0xb0] sm:$0xff]   ;;  %v808_v27 = vld [vmem:[%s987_s1 + $0xb8] sm:$0xff]   ;;  %v527_v50 = vld [vmem:[#allocation3] sm:$0x1] }
  0x1f   : > { %477 = vmatprep.mubr.bf16.mxu0 %v671_v25  ;;  %v536_v53 = vld [vmem:[#allocation4] sm:$0x1] }
  0x20   : > { %712 = vmatpush3.bf16.msra.mxu0 %v792_v9 }
  0x21   : > { %743 = vmatpush3.bf16.msra.mxu1 %v793_v10  ;;  %713 = vmatprep.subr.bf16.mxu0 %v794_v11 }
  0x22   : > { %744 = vmatprep.subr.bf16.mxu1 %v839_v2 }
  0x24   : > { %714 = vmatpush3.bf16.msra.mxu0 %v795_v12 }
  0x25   : > { %745 = vmatpush3.bf16.msra.mxu1 %v796_v13  ;;  %715 = vmatprep.subr.bf16.mxu0 %v797_v14 }
  0x26   : > { %746 = vmatprep.subr.bf16.mxu1 %v839_v2 }
  0x28   : > { %716 = vmatpush3.bf16.msra.mxu0 %v798_v15 }
  0x29   : > { %747 = vmatpush3.bf16.msra.mxu1 %v799_v16  ;;  %717 = vmatprep.subr.bf16.mxu0 %v800_v17 }
  0x2a   : > { %748 = vmatprep.subr.bf16.mxu1 %v839_v2 }
  0x2c   : > { %718 = vmatpush3.bf16.msra.mxu0 %v801_v18 }
  0x2d   : > { %749 = vmatpush3.bf16.msra.mxu1 %v802_v19  ;;  %719 = vmatprep.subr.bf16.mxu0 %v803_v20 }
  0x2e   : > { %750 = vmatprep.subr.bf16.mxu1 %v839_v2 }
  0x30   : > { %720 = vmatpush3.bf16.msra.mxu0 %v804_v21 }
  0x31   : > { %751 = vmatpush3.bf16.msra.mxu1 %v805_v22  ;;  %721 = vmatprep.subr.bf16.mxu0 %v806_v23 }
  0x32   : > { %752 = vmatprep.subr.bf16.mxu1 %v839_v2 }
  0x34   : > { %722 = vmatpush3.bf16.msra.mxu0 %v807_v26 }
  0x35   : > { %753 = vmatpush3.bf16.msra.mxu1 %v808_v27 }
  0x37   : > { %478 = vmatmul.mubr.bf16.vlgmr.msra.gmra.mrb[0].mxu0 %v670_v28 }
  0x38   : > { %755 = vmatmul.mubr.bf16.vlgmr.msra.gmra.mrb[0].mxu1 %v811_v29 }
 0x10a   : > { %v723_v30 = vpop.f32.mrb[0].mxu0 }
 0x10b   : > { %v519_v31 = vpop.f32.mrb[0].mxu1  ;;  %v724_v32 = vpop.f32.mrb[1].mxu0 }
 0x10c   : > { %v725_v33 = vadd.f32 %v724_v32, %v723_v30  ;;  %v756_v34 = vpop.f32.mrb[1].mxu1  ;;  %v726_v35 = vpop.f32.mrb[2].mxu0 }
 0x10d   : > { %v522_v36 = vpop.f32.mrb[2].mxu1  ;;  %v727_v37 = vpop.f32.mrb[3].mxu0 }
 0x10e   : > { %v520_v38 = vadd.f32 %v725_v33, %v519_v31  ;;  %v757_v39 = vpop.f32.mrb[3].mxu1 }
 0x110   : > { %526 = vst [vmem:[#allocation2] sm:$0xff] %v520_v38  ;;  %v528_v40 = vrot.slane %v520_v38, 4  ;;  %v537_v41 = vmul.f32 %v520_v38, %v520_v38 }
 0x112   : > { %v529_v42 = vadd.f32 %v528_v40, %v520_v38  ;;  %v538_v43 = vrot.slane %v537_v41, 4 }
 0x114   : > { %v530_v44 = vrot.slane %v529_v42, 2  ;;  %v539_v45 = vadd.f32 %v538_v43, %v537_v41 }
 0x116   : > { %v531_v46 = vadd.f32 %v530_v44, %v529_v42  ;;  %v540_v47 = vrot.slane %v539_v45, 2 }
 0x118   : > { %v532_v48 = vrot.slane %v531_v46, 1  ;;  %v541_v49 = vadd.f32 %v540_v47, %v539_v45 }
 0x11a   : > { %v533_v51 = vadd.f32 %v532_v48, %v531_v46  ;;  %v542_v52 = vrot.slane %v541_v49, 1 }
 0x11c   : > { %v534_v54 = vadd.f32 %v533_v51, %v527_v50  ;;  %v543_v55 = vadd.f32 %v542_v52, %v541_v49 }
 0x11e   : > { %535 = vst [vmem:[#allocation3] sm:$0x1] %v534_v54  ;;  %v544_v56 = vadd.f32 %v543_v55, %v536_v53 }
 0x120   : > { %545 = vst [vmem:[#allocation4] sm:$0x1] %v544_v56 }
 0x121 PF: > { %p546_p6 = scmp.eq.s32.totalorder %s828_s15, 1 }
 0x122   : > { %v558_v1 = vld [vmem:[%s988_s2] sm:$0x1] (%p546_p6) }
 0x123   : > { %550 = sbr.rel (!%p546_p6) target bundleno = 322 (0x142), region = 48  ;;  %v563_v4 = vld [vmem:[%s989_s3] sm:$0x1] (%p546_p6) }
 0x125   : > { %v551_v57 = vld [vmem:[#allocation3] sm:$0x1] (%p546_p6) }
 0x126   : > { %v552_v59 = vmul.f32 (%p546_p6), 0.125, %v551_v57 }
 0x127   : > { %v553_v58 = vld [vmem:[#allocation4] sm:$0x1] (%p546_p6) }
 0x128   : > { %v554_v60 = vmul.f32 (%p546_p6), 0.125, %v553_v58  ;;  %v555_v61 = vmul.f32 (%p546_p6), %v552_v59, %v552_v59 }
 0x12a   : > { %v556_v62 = vsub.f32 %v554_v60, %v555_v61 }
 0x12c   : > { %v557_v63 = vmax.f32 %v556_v62, 0.0 }
 0x12e   : > { %v559_v0 = vadd.f32 1e-05, %v557_v63 }
 0x130   : > { %812 = vrsqrt.f32 %v559_v0 }
 0x13a   : > { %v813_v2 = vpop.eup %812 }
 0x13b   : > { %v561_v3 = vmul.f32 %v813_v2, %v558_v1 }
 0x13d   : > { %562 = vst [vmem:[#allocation5] sm:$0x1] %v561_v3  ;;  %v564_v5 = vmul.f32 %v561_v3, %v552_v59 }
 0x13f   : > { %v565_v6 = vsub.f32 %v563_v4, %v564_v5 }
 0x141   : > { %566 = vst [vmem:[#allocation6] sm:$0x1] %v565_v6 }
 0x142 PF: > { %p698_p7 = scmp.ne.s32.totalorder %s828_s15, 1 }
 0x143   : > { %v571_v7 = vld [vmem:[#allocation2] sm:$0xff] (!%p698_p7) }
 0x144   : > { %569 = sbr.rel (%p698_p7) target bundleno = 337 (0x151), region = 52  ;;  %v699_v8 = vld [vmem:[#allocation5] ss:$0 sm:$0xff] (!%p698_p7) }
 0x145   : > { %v579_v10 = vmul.f32 (!%p698_p7), %v699_v8, %v571_v7 }
 0x148   : > { %v700_v9 = vld [vmem:[#allocation6] ss:$0 sm:$0xff] (!%p698_p7) }
 0x149   : > { %v587_v11 = vadd.f32 (!%p698_p7), %v700_v9, %v579_v10 }
 0x14b   : > { %vm588_vm1 = vcmp.ge.f32.partialorder %v587_v11, 0.0  ;;  %v589_v12 = vmul.f32 0.2, %v587_v11 }
 0x14d   : > { %v590_v13 = vsel %vm588_vm1, %v587_v11, %v589_v12 }
 0x14e   : > { %v591_v14 = vpack.c.bf16 %v590_v13, %v590_v13 }
 0x150   : > { %592 = vst [vmem:[%s990_s4] sm:$0xf] %v591_v14 }
 0x151 PF: > { %s14_s17 = sadd.s32 1, %s836_s17   ;;  %s991_s15 = smov %s832_s16 }
 0x152   : > { %p11_p8 = scmp.ge.s32.totalorder %s14_s17, 4   ;;  %s992_s16 = smov %s994_s18 }
 0x154   :  { %13 = sbr.rel (!%p11_p8) target bundleno = 2 (0x2), region = 84 }

</bundles_post_ra>
